<compile_context>
chip_gen: v5e
topology: v5e:2x2
jax: 0.10.0
libtpu: 0.0.40
codegen_flags: <defaults>
</compile_context>

<pallas_src>
import math

import jax
import jax.numpy as jnp
from jax.experimental import pallas as pl
from jax.experimental.pallas import tpu as pltpu

IMG_SHAPE = (1, 28, 28)
IN_DIM = int(math.prod(IMG_SHAPE))   # 784
H1 = 512
H2 = 256
OUT_DIM = 1
OUT_PAD = 128                        # lane-dense output width
NEG_SLOPE = 0.2
TB_MAX = 1024                        # max batch tile (fits easily in scoped VMEM)


def _round_up(x, m):
    return ((x + m - 1) // m) * m


def _leaky_relu(x, slope):
    return jnp.where(x > 0, x, slope * x)


def _choose_batch_tiling(b, tb_max=TB_MAX):
    """Pick (tb, num_steps) for the 1-D batch grid.

    * at most TB_MAX rows per step,
    * at least 4 steps when each step still gets >= 256 rows (v7x dual-TC
      sharding + per-TC DMA/compute pipelining),
    * tb sized to minimize batch-pad waste (e.g. b=520 -> 2x272, not 2x512),
    * tb a multiple of 16 (bf16 sublane tile of the output block).
    """
    min_steps = min(4, max(1, b // 256))
    num_steps = max(-(-b // tb_max), min_steps)
    tb = _round_up(-(-b // num_steps), 16)
    return tb, num_steps


def _disc_kernel(x_ref, w1_ref, b1_ref, w2_ref, b2_ref, w3_ref, b3_ref, out_ref):
    # Fused MLP: three bf16 MXU matmuls with f32 accumulation; the f32->bf16
    # cast of x, bias-adds and leaky-ReLUs run on the VPU (free under MXU/DMA).
    x = x_ref[...].astype(jnp.bfloat16)                                  # (TB, 784)

    h1 = jnp.dot(x, w1_ref[...], preferred_element_type=jnp.float32) + b1_ref[...]
    h1 = _leaky_relu(h1, NEG_SLOPE)

    h2 = jnp.dot(h1.astype(jnp.bfloat16), w2_ref[...],
                 preferred_element_type=jnp.float32) + b2_ref[...]
    h2 = _leaky_relu(h2, NEG_SLOPE)

    out = jnp.dot(h2.astype(jnp.bfloat16), w3_ref[...],
                  preferred_element_type=jnp.float32) + b3_ref[...]
    out_ref[...] = out.astype(out_ref.dtype)                             # (TB, 128) bf16


def prepare_params(params):
    """One-time reformat of the f32 Linear params for the kernel.

    Hoisted out of the forward pass so the pad/cast HBM traffic happens once.
    w3 / b3 are lane-padded 1 -> 128 columns; weights are cast to bf16 for the
    MXU; biases stay f32 (added after the f32 accumulation).
    """
    w1, b1, w2, b2, w3, b3 = params
    w1_bf = w1.astype(jnp.bfloat16)                                      # (784, 512)
    w2_bf = w2.astype(jnp.bfloat16)                                      # (512, 256)
    w3_bf = jnp.pad(w3, ((0, 0), (0, OUT_PAD - OUT_DIM))).astype(jnp.bfloat16)
    b3_p = jnp.pad(b3, ((0, 0), (0, OUT_PAD - OUT_DIM)))                 # (1, 128) f32
    return (w1_bf, b1, w2_bf, b2, w3_bf, b3_p)


def discriminator_forward(img, prepared_params, *, tb_max=TB_MAX):
    """img: (B, 1, 28, 28) float32. Returns validity: (B, 1) float32."""
    b = img.shape[0]
    x = img.reshape(b, -1).astype(jnp.float32)       # == torch .view(B, -1), (B, 784)

    w1_bf, b1, w2_bf, b2, w3_bf, b3_p = prepared_params

    # --- batch tiling -------------------------------------------------------
    tb, num_steps = _choose_batch_tiling(b, tb_max)
    b_pad = tb * num_steps
    if b_pad != b:
        x = jnp.pad(x, ((0, b_pad - b), (0, 0)))
    grid = (num_steps,)

    flops = 2 * b_pad * (IN_DIM * H1 + H1 * H2 + H2 * OUT_PAD)
    bytes_accessed = (
        4 * x.size                                        # f32 activations in
        + 2 * (w1_bf.size + w2_bf.size + w3_bf.size)      # bf16 weights
        + 4 * (b1.size + b2.size + b3_p.size)             # f32 biases
        + 2 * b_pad * OUT_PAD                             # bf16 output
    )

    out = pl.pallas_call(
        _disc_kernel,
        out_shape=jax.ShapeDtypeStruct((b_pad, OUT_PAD), jnp.bfloat16),
        grid=grid,
        in_specs=[
            pl.BlockSpec((tb, IN_DIM), lambda i: (i, 0)),     # x: tiled over batch
            pl.BlockSpec((IN_DIM, H1), lambda i: (0, 0)),     # w1: resident
            pl.BlockSpec((1, H1), lambda i: (0, 0)),          # b1: resident
            pl.BlockSpec((H1, H2), lambda i: (0, 0)),         # w2: resident
            pl.BlockSpec((1, H2), lambda i: (0, 0)),          # b2: resident
            pl.BlockSpec((H2, OUT_PAD), lambda i: (0, 0)),    # w3: resident
            pl.BlockSpec((1, OUT_PAD), lambda i: (0, 0)),     # b3: resident
        ],
        out_specs=pl.BlockSpec((tb, OUT_PAD), lambda i: (i, 0)),
        compiler_params=pltpu.CompilerParams(
            dimension_semantics=("parallel",),
            vmem_limit_bytes=48 * 1024 * 1024,
        ),
        cost_estimate=pl.CostEstimate(
            flops=flops, transcendentals=0, bytes_accessed=bytes_accessed),
    )(x, w1_bf, b1, w2_bf, b2, w3_bf, b3_p)

    # Strip batch padding and the lane-padded output columns; back to f32.
    return out[:b, :OUT_DIM].astype(jnp.float32)


def init_params(key):
    """nn.Linear-style init, U(-1/sqrt(fan_in), 1/sqrt(fan_in)).

    Weights stored as (in_features, out_features) (transpose of torch), so the
    kernel computes y = x @ W + b == x @ W_torch.T + b. Biases are (1, out).
    """
    keys = jax.random.split(key, 6)

    def linear(kw, kb, fan_in, fan_out):
        bound = 1.0 / math.sqrt(fan_in)
        w = jax.random.uniform(kw, (fan_in, fan_out), jnp.float32, -bound, bound)
        bias = jax.random.uniform(kb, (1, fan_out), jnp.float32, -bound, bound)
        return w, bias

    w1, b1 = linear(keys[0], keys[1], IN_DIM, H1)
    w2, b2 = linear(keys[2], keys[3], H1, H2)
    w3, b3 = linear(keys[4], keys[5], H2, OUT_DIM)
    return (w1, b1, w2, b2, w3, b3)


if __name__ == "__main__":
    key = jax.random.PRNGKey(0)
    k_img, k_params = jax.random.split(key)

    batch = 2
    img = jax.random.normal(k_img, (batch,) + IMG_SHAPE, dtype=jnp.float32)
    params = init_params(k_params)
    prepared = prepare_params(params)          # one-time weight reformat

    validity = discriminator_forward(img, prepared)
    validity = jax.block_until_ready(validity)

    # Pure-JAX reference matching the kernel's precision path
    # (bf16 MXU inputs, f32 accumulation, f32 bias/activation, bf16 output).
    x = img.reshape(batch, -1)
    w1, b1, w2, b2, w3, b3 = params
    xb = x.astype(jnp.bfloat16)
    w1b, w2b, w3b = (w.astype(jnp.bfloat16) for w in (w1, w2, w3))
    h1 = jnp.dot(xb, w1b, preferred_element_type=jnp.float32) + b1
    h1 = jnp.where(h1 > 0, h1, NEG_SLOPE * h1)
    h2 = jnp.dot(h1.astype(jnp.bfloat16), w2b, preferred_element_type=jnp.float32) + b2
    h2 = jnp.where(h2 > 0, h2, NEG_SLOPE * h2)
    ref = jnp.dot(h2.astype(jnp.bfloat16), w3b, preferred_element_type=jnp.float32) + b3

    assert validity.shape == (batch, 1), validity.shape
    assert jnp.allclose(validity, ref, atol=1e-2, rtol=1e-2), "mismatch vs reference"

    print("KERNEL_OK")
</pallas_src>

<mosaic_0001>
module attributes {stable_mosaic.version = 11 : i64} {
  func.func @_disc_kernel(%arg0: i32, %arg1: memref<16x784xf32, #tpu.memory_space<vmem>>, %arg2: memref<784x512xbf16, #tpu.memory_space<vmem>>, %arg3: memref<1x512xf32, #tpu.memory_space<vmem>>, %arg4: memref<512x256xbf16, #tpu.memory_space<vmem>>, %arg5: memref<1x256xf32, #tpu.memory_space<vmem>>, %arg6: memref<256x128xbf16, #tpu.memory_space<vmem>>, %arg7: memref<1x128xf32, #tpu.memory_space<vmem>>, %arg8: memref<16x128xbf16, #tpu.memory_space<vmem>>) attributes {dimension_semantics = [#tpu.dimension_semantics<parallel>], iteration_bounds = array<i64: 1>, scalar_prefetch = 0 : i64, scratch_operands = 0 : i64, tpu.core_type = #tpu.core_type<tc>, window_params = [{transform_indices = @transform_0, window_bounds = array<i64: 16, 784>}, {pipeline_mode = #tpu.pipeline_mode<synchronous>, transform_indices = @transform_1, window_bounds = array<i64: 784, 512>}, {pipeline_mode = #tpu.pipeline_mode<synchronous>, transform_indices = @transform_2, window_bounds = array<i64: 1, 512>}, {pipeline_mode = #tpu.pipeline_mode<synchronous>, transform_indices = @transform_3, window_bounds = array<i64: 512, 256>}, {pipeline_mode = #tpu.pipeline_mode<synchronous>, transform_indices = @transform_4, window_bounds = array<i64: 1, 256>}, {pipeline_mode = #tpu.pipeline_mode<synchronous>, transform_indices = @transform_5, window_bounds = array<i64: 256, 128>}, {pipeline_mode = #tpu.pipeline_mode<synchronous>, transform_indices = @transform_6, window_bounds = array<i64: 1, 128>}, {transform_indices = @transform_7, window_bounds = array<i64: 16, 128>}]} {
    %c0 = arith.constant 0 : index
    %c0_0 = arith.constant 0 : index
    %0 = vector.load %arg1[%c0, %c0_0] : memref<16x784xf32, #tpu.memory_space<vmem>>, vector<16x784xf32>
    %1 = arith.truncf %0 : vector<16x784xf32> to vector<16x784xbf16>
    %c0_1 = arith.constant 0 : index
    %c0_2 = arith.constant 0 : index
    %2 = vector.load %arg2[%c0_1, %c0_2] : memref<784x512xbf16, #tpu.memory_space<vmem>>, vector<784x512xbf16>
    %cst = arith.constant dense<0.000000e+00> : vector<16x512xf32>
    %3 = tpu.matmul %1, %2, %cst {dimension_numbers = #tpu.dot_dimension_numbers<[1], [0], [0], [1], [0, 0, 1, 1], [], []>} : vector<16x784xbf16>, vector<784x512xbf16>, vector<16x512xf32> -> vector<16x512xf32>
    %c0_3 = arith.constant 0 : index
    %c0_4 = arith.constant 0 : index
    %4 = vector.load %arg3[%c0_3, %c0_4] : memref<1x512xf32, #tpu.memory_space<vmem>>, vector<1x512xf32>
    %5 = vector.broadcast %4 : vector<1x512xf32> to vector<16x512xf32>
    %6 = arith.addf %3, %5 : vector<16x512xf32>
    %cst_5 = arith.constant 0.000000e+00 : f32
    %7 = vector.broadcast %cst_5 : f32 to vector<16x512xf32>
    %8 = arith.cmpf ogt, %6, %7 : vector<16x512xf32>
    %cst_6 = arith.constant 2.000000e-01 : f32
    %9 = vector.broadcast %cst_6 : f32 to vector<16x512xf32>
    %10 = arith.mulf %9, %6 : vector<16x512xf32>
    %11 = arith.select %8, %6, %10 : vector<16x512xi1>, vector<16x512xf32>
    %12 = arith.truncf %11 : vector<16x512xf32> to vector<16x512xbf16>
    %c0_7 = arith.constant 0 : index
    %c0_8 = arith.constant 0 : index
    %13 = vector.load %arg4[%c0_7, %c0_8] : memref<512x256xbf16, #tpu.memory_space<vmem>>, vector<512x256xbf16>
    %cst_9 = arith.constant dense<0.000000e+00> : vector<16x256xf32>
    %14 = tpu.matmul %12, %13, %cst_9 {dimension_numbers = #tpu.dot_dimension_numbers<[1], [0], [0], [1], [0, 0, 1, 1], [], []>} : vector<16x512xbf16>, vector<512x256xbf16>, vector<16x256xf32> -> vector<16x256xf32>
    %c0_10 = arith.constant 0 : index
    %c0_11 = arith.constant 0 : index
    %15 = vector.load %arg5[%c0_10, %c0_11] : memref<1x256xf32, #tpu.memory_space<vmem>>, vector<1x256xf32>
    %16 = vector.broadcast %15 : vector<1x256xf32> to vector<16x256xf32>
    %17 = arith.addf %14, %16 : vector<16x256xf32>
    %cst_12 = arith.constant 0.000000e+00 : f32
    %18 = vector.broadcast %cst_12 : f32 to vector<16x256xf32>
    %19 = arith.cmpf ogt, %17, %18 : vector<16x256xf32>
    %cst_13 = arith.constant 2.000000e-01 : f32
    %20 = vector.broadcast %cst_13 : f32 to vector<16x256xf32>
    %21 = arith.mulf %20, %17 : vector<16x256xf32>
    %22 = arith.select %19, %17, %21 : vector<16x256xi1>, vector<16x256xf32>
    %23 = arith.truncf %22 : vector<16x256xf32> to vector<16x256xbf16>
    %c0_14 = arith.constant 0 : index
    %c0_15 = arith.constant 0 : index
    %24 = vector.load %arg6[%c0_14, %c0_15] : memref<256x128xbf16, #tpu.memory_space<vmem>>, vector<256x128xbf16>
    %cst_16 = arith.constant dense<0.000000e+00> : vector<16x128xf32>
    %25 = tpu.matmul %23, %24, %cst_16 {dimension_numbers = #tpu.dot_dimension_numbers<[1], [0], [0], [1], [0, 0, 1, 1], [], []>} : vector<16x256xbf16>, vector<256x128xbf16>, vector<16x128xf32> -> vector<16x128xf32>
    %c0_17 = arith.constant 0 : index
    %c0_18 = arith.constant 0 : index
    %26 = vector.load %arg7[%c0_17, %c0_18] : memref<1x128xf32, #tpu.memory_space<vmem>>, vector<1x128xf32>
    %27 = vector.broadcast %26 : vector<1x128xf32> to vector<16x128xf32>
    %28 = arith.addf %25, %27 : vector<16x128xf32>
    %29 = arith.truncf %28 : vector<16x128xf32> to vector<16x128xbf16>
    %c0_19 = arith.constant 0 : index
    %c0_20 = arith.constant 0 : index
    %30 = vector.load %arg8[%c0_19, %c0_20] : memref<16x128xbf16, #tpu.memory_space<vmem>>, vector<16x128xbf16>
    tpu.vector_store %arg8[%c0_19, %c0_20], %29 {strides = array<i32>} : memref<16x128xbf16, #tpu.memory_space<vmem>>, vector<16x128xbf16>,
    return
  }
  func.func @transform_0(%arg0: i32) -> (i32, i32) {
    %c0_i32 = arith.constant 0 : i32
    %c0_i32_0 = arith.constant 0 : i32
    return %arg0, %c0_i32 : i32, i32
  }
  func.func @transform_1(%arg0: i32) -> (i32, i32) {
    %c0_i32 = arith.constant 0 : i32
    %c0_i32_0 = arith.constant 0 : i32
    %c0_i32_1 = arith.constant 0 : i32
    return %c0_i32, %c0_i32_0 : i32, i32
  }
  func.func @transform_2(%arg0: i32) -> (i32, i32) {
    %c0_i32 = arith.constant 0 : i32
    %c0_i32_0 = arith.constant 0 : i32
    %c0_i32_1 = arith.constant 0 : i32
    return %c0_i32, %c0_i32_0 : i32, i32
  }
  func.func @transform_3(%arg0: i32) -> (i32, i32) {
    %c0_i32 = arith.constant 0 : i32
    %c0_i32_0 = arith.constant 0 : i32
    %c0_i32_1 = arith.constant 0 : i32
    return %c0_i32, %c0_i32_0 : i32, i32
  }
  func.func @transform_4(%arg0: i32) -> (i32, i32) {
    %c0_i32 = arith.constant 0 : i32
    %c0_i32_0 = arith.constant 0 : i32
    %c0_i32_1 = arith.constant 0 : i32
    return %c0_i32, %c0_i32_0 : i32, i32
  }
  func.func @transform_5(%arg0: i32) -> (i32, i32) {
    %c0_i32 = arith.constant 0 : i32
    %c0_i32_0 = arith.constant 0 : i32
    %c0_i32_1 = arith.constant 0 : i32
    return %c0_i32, %c0_i32_0 : i32, i32
  }
  func.func @transform_6(%arg0: i32) -> (i32, i32) {
    %c0_i32 = arith.constant 0 : i32
    %c0_i32_0 = arith.constant 0 : i32
    %c0_i32_1 = arith.constant 0 : i32
    return %c0_i32, %c0_i32_0 : i32, i32
  }
  func.func @transform_7(%arg0: i32) -> (i32, i32) {
    %c0_i32 = arith.constant 0 : i32
    %c0_i32_0 = arith.constant 0 : i32
    return %arg0, %c0_i32 : i32, i32
  }
}

</mosaic_0001>

<bundles_post_ra>
// kernel: tpu_custom_call.1
= control target key start
LH: loop header
LB: loop body
LE: loop exit
PB: predicated region body
PF: predicated region fallthrough
CT: control target
= control target key end

     0   :  { %12 = vsyncpa [#allocation3], 0  ;;  %s4136_s0 = inlined_call_operand.hbm [shape: f32[16,784], index: 0, kind: input, shape index: {}]   ;;  %s4137_s1 = inlined_call_operand.hbm [shape: bf16[784,512], index: 1, kind: input, shape index: {}]   ;;  %s4138_s2 = inlined_call_operand.hbm [shape: f32[1,512], index: 2, kind: input, shape index: {}]   ;;  %s4139_s3 = inlined_call_operand.hbm [shape: bf16[512,256], index: 3, kind: input, shape index: {}]   ;;  %s4140_s4 = inlined_call_operand.vmem [shape: f32[1,256], index: 4, kind: input, shape index: {}]   ;;  %s4141_s5 = inlined_call_operand.hbm [shape: bf16[256,128], index: 5, kind: input, shape index: {}]   ;;  %s4142_s6 = inlined_call_operand.vmem [shape: f32[1,128], index: 6, kind: input, shape index: {}]   ;;  %s4143_s7 = inlined_call_operand.hbm [shape: bf16[16,128], index: 7, kind: output, shape index: {}]  }
   0x1   :  { %13 = vsyncpa [#allocation6], 0 }
   0x2   :  { %14 = vsyncpa [#allocation9], 0  ;;  %s33_s26 = sshll.u32 %s4137_s1, 4  ;;  %s34_s26 = int_to_ptr.hbm [resolvable:$true] %s33_s26 }
   0x3   :  { %15 = vsyncpa [#allocation4], 0  ;;  %s3992_s27 = smov [#allocation5]   ;;  %s57_s8 = sshll.u32 %s4139_s3, 4  ;;  %s58_s8 = int_to_ptr.hbm [resolvable:$true] %s57_s8 }
   0x4   :  { %s35_s28 = sshll.u32 %s3992_s27, 4  ;;  %s3993_s9 = smov 256   ;;  %s36_s28 = int_to_ptr.vmem [resolvable:$true] %s35_s28 }
   0x5   :  { %s3994_s10 = smov 16   ;;  %s3995_s11 = smov [#allocation8]  }
   0x6   :  { %41 = dma.hbm_to_vmem [thread:$0]  %s34_s26, 25088, %s36_s28, [#allocation6], %s3993_s9, %s3993_s9, %s3994_s10  }
   0x7   :  { %s59_s12 = sshll.u32 %s3995_s11, 4  ;;  %s3996_s13 = smov 128   ;;  %s60_s12 = int_to_ptr.vmem [resolvable:$true] %s59_s12 }
   0x8   :  { %s3997_s14 = smov 8   ;;  %s20_s16 = sshll.u32 %s4136_s0, 4  ;;  %s21_s16 = int_to_ptr.hbm [resolvable:$true] %s20_s16 }
   0x9   :  { %65 = dma.hbm_to_vmem [thread:$0]  %s58_s8, 8192, %s60_s12, [#allocation9], %s3996_s13, %s3996_s13, %s3997_s14  }
   0xa   :  { %s3998_s17 = smov [#allocation2]   ;;  %s47_s20 = sshll.u32 %s4138_s2, 4  ;;  %s48_s20 = int_to_ptr.hbm [resolvable:$true] %s47_s20 }
   0xb   :  { %s22_s18 = sshll.u32 %s3998_s17, 4  ;;  %s3999_s21 = smov 896   ;;  %s23_s18 = int_to_ptr.vmem [resolvable:$true] %s22_s18 }
   0xc   :  { %s4000_s22 = smov 56   ;;  %s4001_s23 = smov [#allocation7]  }
   0xd   :  { %28 = dma.hbm_to_vmem [thread:$0]  %s21_s16, 1792, %s23_s18, [#allocation3], %s3999_s21, %s3999_s21, %s4000_s22  }
   0xe   :  { %s49_s24 = sshll.u32 %s4001_s23, 4  ;;  %s72_s27 = sshll.u32 %s4141_s5, 4  ;;  %s50_s24 = int_to_ptr.vmem [resolvable:$true] %s49_s24  ;;  %s73_s27 = int_to_ptr.hbm [resolvable:$true] %s72_s27 }
   0xf   :  { %52 = dma.hbm_to_vmem [thread:$0]  %s48_s20, 64, %s50_s24, [#allocation6]  }
  0x10   :  { %s4002_s0 = smov [#allocation10]   ;;  %s4003_s29 = smov 64  }
  0x11   :  { %s74_s28 = sshll.u32 %s4002_s0, 4  ;;  %s4004_s30 = smov 4   ;;  %s75_s28 = int_to_ptr.vmem [resolvable:$true] %s74_s28 }
  0x12   :  { %80 = dma.hbm_to_vmem [thread:$0]  %s73_s27, 2048, %s75_s28, [#allocation9], %s4003_s29, %s4003_s29, %s4004_s30  }
  0x13   :  { %3984 = dma.done.wait [#allocation3], 1792  }
  0x14   :  { %3985 = vsyncadd [#allocation3], 4294965504 }
  0x15   :  { %3986 = dma.done.wait [#allocation6], 25152  }
  0x16   :  { %3987 = vsyncadd [#allocation6], 4294942144 }
  0x17   :  { %3988 = dma.done.wait [#allocation9], 10240  }
  0x18   :  { %3989 = vsyncadd [#allocation9], 4294957056  ;;  %v2550_v0 = vld [vmem:[#allocation5 + $0xe0] sm:$0xf]  ;;  %v3574_v1 = vld [vmem:[#allocation5 + $0xec] sm:$0xf0] }
  0x19   :  { %v2678_v2 = vld [vmem:[#allocation5 + $0x1e0] sm:$0xf]  ;;  %v2551_v3 = vor.u32 %v3574_v1, %v2550_v0  ;;  %v3606_v4 = vld [vmem:[#allocation5 + $0x1ec] sm:$0xf0]  ;;  %vm1311_vm0 = vcmask 130048   ;;  %s4005_s9 = smov [#allocation11]  }
  0x1a   :  { %v2806_v5 = vld [vmem:[#allocation5 + $0x2e0] sm:$0xf]  ;;  %v3638_v6 = vld [vmem:[#allocation5 + $0x2ec] sm:$0xf0]  ;;  %v2679_v7 = vor.u32 %v3606_v4, %v2678_v2  ;;  %s2419_s10 = sshll.u32 %s4005_s9, 4  ;;  %s2421_s13 = sshll.u32 %s4143_s7, 4  ;;  %s2420_s10 = int_to_ptr.vmem [resolvable:$true] %s2419_s10  ;;  %s2422_s13 = int_to_ptr.hbm [resolvable:$true] %s2421_s13 }
  0x1b   :  { %v2807_v8 = vor.u32 %v3638_v6, %v2806_v5  ;;  %v2934_v9 = vld [vmem:[#allocation5 + $0x3e0] sm:$0xf]  ;;  %v3670_v10 = vld [vmem:[#allocation5 + $0x3ec] sm:$0xf0]  ;;  %1315 = vmatpush.bf16.msra.mxu0 %v2551_v3 }
  0x1c   :  { %v2534_v11 = vld [vmem:[#allocation5 + $0xc0] sm:$0xf]  ;;  %v2935_v12 = vor.u32 %v3670_v10, %v2934_v9  ;;  %v3570_v13 = vld [vmem:[#allocation5 + $0xcc] sm:$0xf0]  ;;  %1329 = vmatpush.bf16.msra.mxu1 %v2679_v7 }
  0x1d   :  { %v2662_v14 = vld [vmem:[#allocation5 + $0x1c0] sm:$0xf]  ;;  %v3602_v15 = vld [vmem:[#allocation5 + $0x1cc] sm:$0xf0]  ;;  %1343 = vmatpush.bf16.msra.mxu2 %v2807_v8  ;;  %v2535_v16 = vor.u32 %v3570_v13, %v2534_v11 }
  0x1e   :  { %v2663_v17 = vor.u32 %v3602_v15, %v2662_v14  ;;  %v2790_v18 = vld [vmem:[#allocation5 + $0x2c0] sm:$0xf]  ;;  %v3634_v19 = vld [vmem:[#allocation5 + $0x2cc] sm:$0xf0]  ;;  %1357 = vmatpush.bf16.msra.mxu3 %v2935_v12 }
  0x1f   :  { %v2918_v20 = vld [vmem:[#allocation5 + $0x3c0] sm:$0xf]  ;;  %v2791_v21 = vor.u32 %v3634_v19, %v2790_v18  ;;  %v3666_v22 = vld [vmem:[#allocation5 + $0x3cc] sm:$0xf0]  ;;  %1316 = vmatpush.bf16.msra.mxu0 %v2535_v16 }
  0x20   :  { %v2518_v23 = vld [vmem:[#allocation5 + $0xa0] sm:$0xf]  ;;  %v3566_v24 = vld [vmem:[#allocation5 + $0xac] sm:$0xf0]  ;;  %v2919_v25 = vor.u32 %v3666_v22, %v2918_v20  ;;  %1330 = vmatpush.bf16.msra.mxu1 %v2663_v17 }
  0x21   :  { %v2646_v26 = vld [vmem:[#allocation5 + $0x1a0] sm:$0xf]  ;;  %v3598_v27 = vld [vmem:[#allocation5 + $0x1ac] sm:$0xf0]  ;;  %v2519_v29 = vor.u32 %v3566_v24, %v2518_v23  ;;  %1344 = vmatpush.bf16.msra.mxu2 %v2791_v21 }
  0x22   :  { %v2774_v28 = vld [vmem:[#allocation5 + $0x2a0] sm:$0xf]  ;;  %v3630_v30 = vld [vmem:[#allocation5 + $0x2ac] sm:$0xf0]  ;;  %v2647_v33 = vor.u32 %v3598_v27, %v2646_v26  ;;  %1358 = vmatpush.bf16.msra.mxu3 %v2919_v25 }
  0x23   :  { %v2902_v31 = vld [vmem:[#allocation5 + $0x3a0] sm:$0xf]  ;;  %v3662_v32 = vld [vmem:[#allocation5 + $0x3ac] sm:$0xf0]  ;;  %v2775_v34 = vor.u32 %v3630_v30, %v2774_v28  ;;  %1317 = vmatpush.bf16.msra.mxu0 %v2519_v29 }
  0x24   :  { %v2502_v35 = vld [vmem:[#allocation5 + $0x80] sm:$0xf]  ;;  %v3562_v36 = vld [vmem:[#allocation5 + $0x8c] sm:$0xf0]  ;;  %v2903_v38 = vor.u32 %v3662_v32, %v2902_v31  ;;  %1331 = vmatpush.bf16.msra.mxu1 %v2647_v33  ;;  %v3572_v32 = vld [vmem:[#allocation5 + $0xe4] sm:$0xf] }
  0x25   :  { %v2630_v37 = vld [vmem:[#allocation5 + $0x180] sm:$0xf]  ;;  %v3594_v39 = vld [vmem:[#allocation5 + $0x18c] sm:$0xf0]  ;;  %v2503_v44 = vor.u32 %v3562_v36, %v2502_v35  ;;  %1345 = vmatpush.bf16.msra.mxu2 %v2775_v34  ;;  %v2552_v33 = vld [vmem:[#allocation5 + $0xf0] sm:$0xf0] }
  0x26   :  { %v2758_v40 = vld [vmem:[#allocation5 + $0x280] sm:$0xf]  ;;  %v3626_v41 = vld [vmem:[#allocation5 + $0x28c] sm:$0xf0]  ;;  %v2631_v45 = vor.u32 %v3594_v39, %v2630_v37  ;;  %1359 = vmatpush.bf16.msra.mxu3 %v2903_v38  ;;  %v113_v36 = vld [vmem:[#allocation2 + $0x48] sm:$0xff] }
  0x27   :  { %v2886_v42 = vld [vmem:[#allocation5 + $0x380] sm:$0xf]  ;;  %v3658_v43 = vld [vmem:[#allocation5 + $0x38c] sm:$0xf0]  ;;  %v2759_v46 = vor.u32 %v3626_v41, %v2758_v40  ;;  %1318 = vmatpush.bf16.msra.mxu0 %v2503_v44  ;;  %v3604_v41 = vld [vmem:[#allocation5 + $0x1e4] sm:$0xf] }
  0x28   :  { %v2486_v47 = vld [vmem:[#allocation5 + $0x60] sm:$0xf]  ;;  %v3558_v48 = vld [vmem:[#allocation5 + $0x6c] sm:$0xf0]  ;;  %v2887_v50 = vor.u32 %v3658_v43, %v2886_v42  ;;  %1332 = vmatpush.bf16.msra.mxu1 %v2631_v45  ;;  %v111_v43 = vld [vmem:[#allocation2 + $0x38] sm:$0xff] }
  0x29   :  { %v2614_v49 = vld [vmem:[#allocation5 + $0x160] sm:$0xf]  ;;  %v3590_v51 = vld [vmem:[#allocation5 + $0x16c] sm:$0xf0]  ;;  %v2487_v56 = vor.u32 %v3558_v48, %v2486_v47  ;;  %1346 = vmatpush.bf16.msra.mxu2 %v2759_v46  ;;  %v2680_v46 = vld [vmem:[#allocation5 + $0x1f0] sm:$0xf0] }
  0x2a   :  { %v2742_v52 = vld [vmem:[#allocation5 + $0x260] sm:$0xf]  ;;  %v3622_v53 = vld [vmem:[#allocation5 + $0x26c] sm:$0xf0]  ;;  %v2615_v57 = vor.u32 %v3590_v51, %v2614_v49  ;;  %1360 = vmatpush.bf16.msra.mxu3 %v2887_v50  ;;  %v107_v47 = vld [vmem:[#allocation2 + $0x18] sm:$0xff]  ;;  %v2555_v50 = vor.u32 %v3572_v32, %v2552_v33 }
  0x2b   :  { %v2870_v54 = vld [vmem:[#allocation5 + $0x360] sm:$0xf]  ;;  %v3654_v55 = vld [vmem:[#allocation5 + $0x36c] sm:$0xf0]  ;;  %v2743_v58 = vor.u32 %v3622_v53, %v2742_v52  ;;  %1319 = vmatpush.bf16.msra.mxu0 %v2487_v56 }
  0x2c   :  { %v2470_v59 = vld [vmem:[#allocation5 + $0x40] sm:$0xf]  ;;  %v3554_v60 = vld [vmem:[#allocation5 + $0x4c] sm:$0xf0]  ;;  %v2871_v62 = vor.u32 %v3654_v55, %v2870_v54  ;;  %1333 = vmatpush.bf16.msra.mxu1 %v2615_v57  ;;  %v3568_v57 = vld [vmem:[#allocation5 + $0xc4] sm:$0xf] }
  0x2d   :  { %v2598_v61 = vld [vmem:[#allocation5 + $0x140] sm:$0xf]  ;;  %v3586_v63 = vld [vmem:[#allocation5 + $0x14c] sm:$0xf0]  ;;  %v2471_v4 = vor.u32 %v3554_v60, %v2470_v59  ;;  %1347 = vmatpush.bf16.msra.mxu2 %v2743_v58  ;;  %v2536_v58 = vld [vmem:[#allocation5 + $0xd0] sm:$0xf0] }
  0x2e   :  { %v2726_v0 = vld [vmem:[#allocation5 + $0x240] sm:$0xf]  ;;  %v3618_v1 = vld [vmem:[#allocation5 + $0x24c] sm:$0xf0]  ;;  %v2599_v6 = vor.u32 %v3586_v63, %v2598_v61  ;;  %1361 = vmatpush.bf16.msra.mxu3 %v2871_v62  ;;  %v105_v61 = vld [vmem:[#allocation2 + $0x8] sm:$0xff]  ;;  %v2683_v63 = vor.u32 %v3604_v41, %v2680_v46 }
  0x2f   :  { %v2854_v2 = vld [vmem:[#allocation5 + $0x340] sm:$0xf]  ;;  %v3650_v3 = vld [vmem:[#allocation5 + $0x34c] sm:$0xf0]  ;;  %v2727_v7 = vor.u32 %v3618_v1, %v2726_v0  ;;  %1320 = vmatpush.bf16.msra.mxu0 %v2471_v4  ;;  %v3600_v1 = vld [vmem:[#allocation5 + $0x1c4] sm:$0xf]  ;;  %v2539_v4 = vor.u32 %v3568_v57, %v2536_v58 }
  0x30   :  { %v2454_v5 = vld [vmem:[#allocation5 + $0x20] sm:$0xf]  ;;  %v3550_v8 = vld [vmem:[#allocation5 + $0x2c] sm:$0xf0]  ;;  %v2855_v11 = vor.u32 %v3650_v3, %v2854_v2  ;;  %1334 = vmatpush.bf16.msra.mxu1 %v2599_v6  ;;  %v2664_v2 = vld [vmem:[#allocation5 + $0x1d0] sm:$0xf0] }
  0x31   :  { %v2582_v9 = vld [vmem:[#allocation5 + $0x120] sm:$0xf]  ;;  %v3582_v10 = vld [vmem:[#allocation5 + $0x12c] sm:$0xf0]  ;;  %v2455_v18 = vor.u32 %v3550_v8, %v2454_v5  ;;  %1348 = vmatpush.bf16.msra.mxu2 %v2727_v7  ;;  %v2616_v41 = vld [vmem:[#allocation5 + $0x170] sm:$0xf0] }
  0x32   :  { %v2710_v12 = vld [vmem:[#allocation5 + $0x220] sm:$0xf]  ;;  %v3614_v13 = vld [vmem:[#allocation5 + $0x22c] sm:$0xf0]  ;;  %v2583_v23 = vor.u32 %v3582_v10, %v2582_v9  ;;  %1362 = vmatpush.bf16.msra.mxu3 %v2855_v11  ;;  %v3564_v10 = vld [vmem:[#allocation5 + $0xa4] sm:$0xf] }
  0x33   :  { %v2838_v14 = vld [vmem:[#allocation5 + $0x320] sm:$0xf]  ;;  %v3646_v15 = vld [vmem:[#allocation5 + $0x32c] sm:$0xf0]  ;;  %v2711_v24 = vor.u32 %v3614_v13, %v2710_v12  ;;  %1321 = vmatpush.bf16.msra.mxu0 %v2455_v18  ;;  %v2520_v11 = vld [vmem:[#allocation5 + $0xb0] sm:$0xf0]  ;;  %v2667_v12 = vor.u32 %v3600_v1, %v2664_v2 }
  0x34   :  { %v2438_v16 = vld [vmem:[#allocation5] sm:$0xf]  ;;  %v3546_v17 = vld [vmem:[#allocation5 + $0xc] sm:$0xf0]  ;;  %v2839_v28 = vor.u32 %v3646_v15, %v2838_v14  ;;  %1335 = vmatpush.bf16.msra.mxu1 %v2583_v23  ;;  %v3596_v14 = vld [vmem:[#allocation5 + $0x1a4] sm:$0xf] }
  0x35   :  { %v2566_v19 = vld [vmem:[#allocation5 + $0x100] sm:$0xf]  ;;  %v3578_v20 = vld [vmem:[#allocation5 + $0x10c] sm:$0xf0]  ;;  %v2439_v35 = vor.u32 %v3546_v17, %v2438_v16  ;;  %1349 = vmatpush.bf16.msra.mxu2 %v2711_v24  ;;  %v2648_v15 = vld [vmem:[#allocation5 + $0x1b0] sm:$0xf0]  ;;  %v2523_v17 = vor.u32 %v3564_v10, %v2520_v11 }
  0x36   :  { %v2694_v21 = vld [vmem:[#allocation5 + $0x200] sm:$0xf]  ;;  %v3610_v22 = vld [vmem:[#allocation5 + $0x20c] sm:$0xf0]  ;;  %v2567_v39 = vor.u32 %v3578_v20, %v2566_v19  ;;  %1363 = vmatpush.bf16.msra.mxu3 %v2839_v28  ;;  %v2504_v23 = vld [vmem:[#allocation5 + $0x90] sm:$0xf0]  ;;  %v2651_v24 = vor.u32 %v3596_v14, %v2648_v15 }
  0x37   :  { %v2822_v25 = vld [vmem:[#allocation5 + $0x300] sm:$0xf]  ;;  %v3642_v26 = vld [vmem:[#allocation5 + $0x30c] sm:$0xf0]  ;;  %v2695_v40 = vor.u32 %v3610_v22, %v2694_v21  ;;  %1322 = vmatpush.bf16.msra.mxu0 %v2439_v35  ;;  %v3560_v22 = vld [vmem:[#allocation5 + $0x84] sm:$0xf] }
  0x38   :  { %v3062_v27 = vld [vmem:[#allocation5 + $0x4e0] sm:$0xf]  ;;  %v3702_v29 = vld [vmem:[#allocation5 + $0x4ec] sm:$0xf0]  ;;  %v2823_v44 = vor.u32 %v3642_v26, %v2822_v25  ;;  %1336 = vmatpush.bf16.msra.mxu1 %v2567_v39  ;;  %v3592_v26 = vld [vmem:[#allocation5 + $0x184] sm:$0xf] }
  0x39   :  { %v3190_v30 = vld [vmem:[#allocation5 + $0x5e0] sm:$0xf]  ;;  %v3734_v31 = vld [vmem:[#allocation5 + $0x5ec] sm:$0xf0]  ;;  %v3063_v45 = vor.u32 %v3702_v29, %v3062_v27  ;;  %1350 = vmatpush.bf16.msra.mxu2 %v2695_v40  ;;  %v2632_v27 = vld [vmem:[#allocation5 + $0x190] sm:$0xf0]  ;;  %v2507_v29 = vor.u32 %v3560_v22, %v2504_v23 }
  0x3a   :  { %v106_v34 = vld [vmem:[#allocation2 + $0x10] sm:$0xff]  ;;  %v3738_v38 = vld [vmem:[#allocation5 + $0x60c] sm:$0xf0]  ;;  %v3191_v49 = vor.u32 %v3734_v31, %v3190_v30  ;;  %1364 = vmatpush.bf16.msra.mxu3 %v2823_v44  ;;  %v2488_v35 = vld [vmem:[#allocation5 + $0x70] sm:$0xf0] }
  0x3b   :  { %v3206_v37 = vld [vmem:[#allocation5 + $0x600] sm:$0xf]  ;;  %v104_v42 = vld [vmem:[#allocation2] sm:$0xff]  ;;  %v4064_v54 = vpack.c.bf16 %v113_v36, %v106_v34  ;;  %1371 = vmatpush.bf16.msrb.mxu0 %v3063_v45  ;;  %v3556_v34 = vld [vmem:[#allocation5 + $0x64] sm:$0xf] }
  0x3c   :  { %v114_v48 = vld [vmem:[#allocation2 + $0x50] sm:$0xff]  ;;  %v3698_v52 = vld [vmem:[#allocation5 + $0x4cc] sm:$0xf0]  ;;  %v4066_v55 = vpack.c.bf16 %v111_v43, %v104_v42  ;;  %v3207_v59 = vor.u32 %v3738_v38, %v3206_v37  ;;  %1385 = vmatpush.bf16.msrb.mxu1 %v3191_v49  ;;  %v117_v37 = vld [vmem:[#allocation2 + $0x68] sm:$0xff]  ;;  %v2635_v38 = vor.u32 %v3592_v26, %v2632_v27  ;;  %v2491_v43 = vor.u32 %v3556_v34, %v2488_v35 }
  0x3d   :  { %v3046_v51 = vld [vmem:[#allocation5 + $0x4c0] sm:$0xf]  ;;  %v3730_v56 = vld [vmem:[#allocation5 + $0x5cc] sm:$0xf0]  ;;  %v4068_v60 = vpack.c.bf16 %v114_v48, %v107_v47  ;;  %1351 = vmatmul.bf16.vlgmr.msra.gmra.mxu2 %v4064_v54  ;;  %v3588_v40 = vld [vmem:[#allocation5 + $0x164] sm:$0xf] }
  0x3e   :  { %v3174_v53 = vld [vmem:[#allocation5 + $0x5c0] sm:$0xf]  ;;  %v112_v62 = vld [vmem:[#allocation2 + $0x40] sm:$0xff]  ;;  %v3047_v0 = vor.u32 %v3698_v52, %v3046_v51  ;;  %1413 = vmatpush.bf16.msrb.mxu3 %v2555_v50  ;;  %1323 = vmatmul.bf16.vlgmr.msra.gmra.mxu0 %v4066_v55  ;;  %v3552_v48 = vld [vmem:[#allocation5 + $0x44] sm:$0xf]  ;;  %v2619_v51 = vor.u32 %v3588_v40, %v2616_v41 }
  0x3f   :  { %v3175_v3 = vor.u32 %v3730_v56, %v3174_v53  ;;  %v3030_v5 = vld [vmem:[#allocation5 + $0x4a0] sm:$0xf]  ;;  %v3694_v6 = vld [vmem:[#allocation5 + $0x4ac] sm:$0xf0]  ;;  %v4072_v8 = vpack.c.bf16 %v112_v62, %v105_v61  ;;  %1406 = vmatpush.bf16.msrb.mxu2 %v3207_v59  ;;  %1365 = vmatmul.bf16.vlgmr.msra.gmra.mxu3 %v4068_v60  ;;  %v2472_v49 = vld [vmem:[#allocation5 + $0x50] sm:$0xf0] }
  0x40   :  { %v3158_v7 = vld [vmem:[#allocation5 + $0x5a0] sm:$0xf]  ;;  %v3726_v9 = vld [vmem:[#allocation5 + $0x5ac] sm:$0xf0]  ;;  %1372 = vmatpush.bf16.msrb.mxu0 %v3047_v0  ;;  %v3031_v13 = vor.u32 %v3694_v6, %v3030_v5  ;;  %v3584_v53 = vld [vmem:[#allocation5 + $0x144] sm:$0xf]  ;;  %v2475_v58 = vor.u32 %v3552_v48, %v2472_v49 }
  0x41   :  { %1386 = vmatpush.bf16.msrb.mxu1 %v3175_v3  ;;  %v3159_v16 = vor.u32 %v3726_v9, %v3158_v7  ;;  %v3014_v18 = vld [vmem:[#allocation5 + $0x480] sm:$0xf]  ;;  %v3690_v19 = vld [vmem:[#allocation5 + $0x48c] sm:$0xf0]  ;;  %v2600_v56 = vld [vmem:[#allocation5 + $0x150] sm:$0xf0] }
  0x42   :  { %1414 = vmatpush.bf16.msrb.mxu3 %v2539_v4  ;;  %v3142_v20 = vld [vmem:[#allocation5 + $0x580] sm:$0xf]  ;;  %1337 = vmatmul.bf16.vlgmr.msra.gmra.mxu1 %v4072_v8  ;;  %v3722_v21 = vld [vmem:[#allocation5 + $0x58c] sm:$0xf0]  ;;  %v3015_v25 = vor.u32 %v3690_v19, %v3014_v18  ;;  %v3548_v0 = vld [vmem:[#allocation5 + $0x24] sm:$0xf]  ;;  %v2603_v4 = vor.u32 %v3584_v53, %v2600_v56 }
  0x43   :  { %1427 = vmatpush.bf16.msra.mxu2 %v2683_v63  ;;  %v3143_v28 = vor.u32 %v3722_v21, %v3142_v20  ;;  %v2998_v30 = vld [vmem:[#allocation5 + $0x460] sm:$0xf]  ;;  %v3686_v31 = vld [vmem:[#allocation5 + $0x46c] sm:$0xf0]  ;;  %v2456_v1 = vld [vmem:[#allocation5 + $0x30] sm:$0xf0] }
  0x44   :  { %1373 = vmatpush.bf16.msrb.mxu0 %v3031_v13  ;;  %v3126_v32 = vld [vmem:[#allocation5 + $0x560] sm:$0xf]  ;;  %v3718_v33 = vld [vmem:[#allocation5 + $0x56c] sm:$0xf0]  ;;  %v2999_v39 = vor.u32 %v3686_v31, %v2998_v30  ;;  %v3580_v2 = vld [vmem:[#allocation5 + $0x124] sm:$0xf]  ;;  %v2459_v11 = vor.u32 %v3548_v0, %v2456_v1 }
  0x45   :  { %1387 = vmatpush.bf16.msrb.mxu1 %v3159_v16  ;;  %v110_v36 = vld [vmem:[#allocation2 + $0x30] sm:$0xff]  ;;  %v3127_v42 = vor.u32 %v3718_v33, %v3126_v32  ;;  %v3682_v45 = vld [vmem:[#allocation5 + $0x44c] sm:$0xf0]  ;;  %v2584_v3 = vld [vmem:[#allocation5 + $0x130] sm:$0xf0] }
  0x46   :  { %1415 = vmatpush.bf16.msrb.mxu3 %v2523_v17  ;;  %v2982_v44 = vld [vmem:[#allocation5 + $0x440] sm:$0xf]  ;;  %v3714_v47 = vld [vmem:[#allocation5 + $0x54c] sm:$0xf0]  ;;  %v4076_v50 = vpack.c.bf16 %v117_v37, %v110_v36  ;;  %v3544_v13 = vld [vmem:[#allocation5 + $0x4] sm:$0xf]  ;;  %v2587_v21 = vor.u32 %v3580_v2, %v2584_v3 }
  0x47   :  { %1428 = vmatpush.bf16.msra.mxu2 %v2667_v12  ;;  %v3110_v46 = vld [vmem:[#allocation5 + $0x540] sm:$0xf]  ;;  %v2983_v52 = vor.u32 %v3682_v45, %v2982_v44  ;;  %v3678_v61 = vld [vmem:[#allocation5 + $0x42c] sm:$0xf0]  ;;  %v2440_v14 = vld [vmem:[#allocation5 + $0x10] sm:$0xf0] }
  0x48   :  { %1374 = vmatpush.bf16.msrb.mxu0 %v3015_v25  ;;  %v3111_v57 = vor.u32 %v3714_v47, %v3110_v46  ;;  %v2966_v59 = vld [vmem:[#allocation5 + $0x420] sm:$0xf]  ;;  %v3710_v63 = vld [vmem:[#allocation5 + $0x52c] sm:$0xf0]  ;;  %v3636_v15 = vld [vmem:[#allocation5 + $0x2e4] sm:$0xf]  ;;  %v2443_v27 = vor.u32 %v3544_v13, %v2440_v14 }
  0x49   :  { %1388 = vmatpush.bf16.msrb.mxu1 %v3143_v28  ;;  %v3094_v62 = vld [vmem:[#allocation5 + $0x520] sm:$0xf]  ;;  %v2967_v5 = vor.u32 %v3678_v61, %v2966_v59  ;;  %v3674_v7 = vld [vmem:[#allocation5 + $0x40c] sm:$0xf0]  ;;  %v2808_v16 = vld [vmem:[#allocation5 + $0x2f0] sm:$0xf0] }
  0x4a   :  { %1416 = vmatpush.bf16.msrb.mxu3 %v2507_v29  ;;  %v2950_v6 = vld [vmem:[#allocation5 + $0x400] sm:$0xf]  ;;  %v3095_v10 = vor.u32 %v3710_v63, %v3094_v62  ;;  %v3706_v12 = vld [vmem:[#allocation5 + $0x50c] sm:$0xf0]  ;;  %v3668_v17 = vld [vmem:[#allocation5 + $0x3e4] sm:$0xf]  ;;  %v2811_v31 = vor.u32 %v3636_v15, %v2808_v16 }
  0x4b   :  { %1429 = vmatpush.bf16.msra.mxu2 %v2651_v24  ;;  %v3078_v9 = vld [vmem:[#allocation5 + $0x500] sm:$0xf]  ;;  %v2936_v18 = vld [vmem:[#allocation5 + $0x3f0] sm:$0xf0]  ;;  %v3700_v19 = vld [vmem:[#allocation5 + $0x4e4] sm:$0xf]  ;;  %v2951_v22 = vor.u32 %v3674_v7, %v2950_v6 }
  0x4c   :  { %1375 = vmatpush.bf16.msrb.mxu0 %v2999_v39  ;;  %v3064_v20 = vld [vmem:[#allocation5 + $0x4f0] sm:$0xf0]  ;;  %v115_v24 = vld [vmem:[#allocation2 + $0x58] sm:$0xff]  ;;  %v3576_v25 = vld [vmem:[#allocation5 + $0x104] sm:$0xf]  ;;  %v3079_v26 = vor.u32 %v3706_v12, %v3078_v9  ;;  %v2939_v32 = vor.u32 %v3668_v17, %v2936_v18 }
  0x4d   :  { %1389 = vmatpush.bf16.msrb.mxu1 %v3127_v42  ;;  %3220 = vmatmul.msk.bf16.vlgmr.msrb.gmra.mxu2 %vm1311_vm0, %v4076_v50  ;;  %v108_v23 = vld [vmem:[#allocation2 + $0x20] sm:$0xff]  ;;  %v109_v29 = vld [vmem:[#allocation2 + $0x28] sm:$0xff]  ;;  %v3732_v33 = vld [vmem:[#allocation5 + $0x5e4] sm:$0xf]  ;;  %v3067_v36 = vor.u32 %v3700_v19, %v3064_v20 }
  0x4e   :  { %1417 = vmatpush.bf16.msrb.mxu3 %v2491_v43  ;;  %v2568_v28 = vld [vmem:[#allocation5 + $0x110] sm:$0xf0]  ;;  %v3632_v35 = vld [vmem:[#allocation5 + $0x2c4] sm:$0xf]  ;;  %v4080_v37 = vpack.c.bf16 %v115_v24, %v108_v23 }
  0x4f   :  { %1430 = vmatpush.bf16.msra.mxu2 %v2635_v38  ;;  %v116_v30 = vld [vmem:[#allocation2 + $0x60] sm:$0xff]  ;;  %v3664_v39 = vld [vmem:[#allocation5 + $0x3c4] sm:$0xf]  ;;  %v2571_v41 = vor.u32 %v3576_v25, %v2568_v28 }
  0x50   :  { %1376 = vmatpush.bf16.msrb.mxu0 %v2983_v52  ;;  %v3192_v34 = vld [vmem:[#allocation5 + $0x5f0] sm:$0xf0]  ;;  %v4082_v42 = vpack.c.bf16 %v116_v30, %v109_v29  ;;  %v3696_v43 = vld [vmem:[#allocation5 + $0x4c4] sm:$0xf] }
  0x51   :  { %1390 = vmatpush.bf16.msrb.mxu1 %v3111_v57  ;;  %v2792_v38 = vld [vmem:[#allocation5 + $0x2d0] sm:$0xf0]  ;;  %v3195_v45 = vor.u32 %v3732_v33, %v3192_v34  ;;  %v3728_v48 = vld [vmem:[#allocation5 + $0x5c4] sm:$0xf] }
  0x52   :  { %1418 = vmatpush.bf16.msrb.mxu3 %v2475_v58  ;;  %v2920_v40 = vld [vmem:[#allocation5 + $0x3d0] sm:$0xf0]  ;;  %v2795_v46 = vor.u32 %v3632_v35, %v2792_v38  ;;  %v3660_v56 = vld [vmem:[#allocation5 + $0x3a4] sm:$0xf] }
  0x53   :  { %1431 = vmatpush.bf16.msra.mxu2 %v2619_v51  ;;  %v3048_v44 = vld [vmem:[#allocation5 + $0x4d0] sm:$0xf0]  ;;  %v2923_v47 = vor.u32 %v3664_v39, %v2920_v40  ;;  %v3628_v51 = vld [vmem:[#allocation5 + $0x2a4] sm:$0xf] }
  0x54   :  { %1377 = vmatpush.bf16.msrb.mxu0 %v2967_v5  ;;  %v3176_v49 = vld [vmem:[#allocation5 + $0x5d0] sm:$0xf0]  ;;  %v3051_v52 = vor.u32 %v3696_v43, %v3048_v44  ;;  %v3692_v58 = vld [vmem:[#allocation5 + $0x4a4] sm:$0xf] }
  0x55   :  { %1391 = vmatpush.bf16.msrb.mxu1 %v3095_v10  ;;  %v2776_v53 = vld [vmem:[#allocation5 + $0x2b0] sm:$0xf0]  ;;  %v3179_v61 = vor.u32 %v3728_v48, %v3176_v49  ;;  %v3724_v0 = vld [vmem:[#allocation5 + $0x5a4] sm:$0xf] }
  0x56   :  { %1419 = vmatpush.bf16.msrb.mxu3 %v2459_v11  ;;  %v2904_v57 = vld [vmem:[#allocation5 + $0x3b0] sm:$0xf0]  ;;  %v2779_v62 = vor.u32 %v3628_v51, %v2776_v53  ;;  %v3624_v2 = vld [vmem:[#allocation5 + $0x284] sm:$0xf] }
  0x57   :  { %1432 = vmatpush.bf16.msra.mxu2 %v2603_v4  ;;  %v3032_v59 = vld [vmem:[#allocation5 + $0x4b0] sm:$0xf0]  ;;  %v2907_v63 = vor.u32 %v3660_v56, %v2904_v57  ;;  %v3656_v5 = vld [vmem:[#allocation5 + $0x384] sm:$0xf] }
  0x58   :  { %1378 = vmatpush.bf16.msrb.mxu0 %v2951_v22  ;;  %v3160_v1 = vld [vmem:[#allocation5 + $0x5b0] sm:$0xf0]  ;;  %v3035_v3 = vor.u32 %v3692_v58, %v3032_v59  ;;  %v3688_v7 = vld [vmem:[#allocation5 + $0x484] sm:$0xf] }
  0x59   :  { %1392 = vmatpush.bf16.msrb.mxu1 %v3079_v26  ;;  %v2760_v4 = vld [vmem:[#allocation5 + $0x290] sm:$0xf0]  ;;  %v3163_v10 = vor.u32 %v3724_v0, %v3160_v1  ;;  %v3720_v13 = vld [vmem:[#allocation5 + $0x584] sm:$0xf]  ;;  %v2558_v0 = vld [vmem:[#allocation5 + $0xe8] sm:$0xf] }
  0x5a   :  { %1420 = vmatpush.bf16.msrb.mxu3 %v2443_v27  ;;  %v2888_v6 = vld [vmem:[#allocation5 + $0x390] sm:$0xf0]  ;;  %v2763_v11 = vor.u32 %v3624_v2, %v2760_v4  ;;  %v3620_v15 = vld [vmem:[#allocation5 + $0x264] sm:$0xf]  ;;  %v3575_v1 = vld [vmem:[#allocation5 + $0xf4] sm:$0xf0] }
  0x5b   :  { %1433 = vmatpush.bf16.msra.mxu2 %v2587_v21  ;;  %1379 = vmatmul.bf16.vlgmr.msrb.gmra.mxu0 %v4080_v37  ;;  %v3016_v9 = vld [vmem:[#allocation5 + $0x490] sm:$0xf0]  ;;  %v2891_v12 = vor.u32 %v3656_v5, %v2888_v6  ;;  %v3652_v18 = vld [vmem:[#allocation5 + $0x364] sm:$0xf]  ;;  %v2686_v2 = vld [vmem:[#allocation5 + $0x1e8] sm:$0xf] }
  0x5c   :  { %1441 = vmatpush.bf16.msra.mxu0 %v2811_v31  ;;  %1393 = vmatmul.bf16.vlgmr.msrb.gmra.mxu1 %v4082_v42  ;;  %v3144_v14 = vld [vmem:[#allocation5 + $0x590] sm:$0xf0]  ;;  %v3019_v16 = vor.u32 %v3688_v7, %v3016_v9  ;;  %v3684_v20 = vld [vmem:[#allocation5 + $0x464] sm:$0xf]  ;;  %v3607_v4 = vld [vmem:[#allocation5 + $0x1f4] sm:$0xf0] }
  0x5d   :  { %1455 = vmatpush.bf16.msra.mxu1 %v2939_v32  ;;  %1421 = vmatmul.bf16.vlgmr.msrb.gmra.mxu3 %v4066_v55  ;;  %v2744_v17 = vld [vmem:[#allocation5 + $0x270] sm:$0xf0]  ;;  %v3147_v22 = vor.u32 %v3720_v13, %v3144_v14  ;;  %v3716_v25 = vld [vmem:[#allocation5 + $0x564] sm:$0xf]  ;;  %v2559_v13 = vor.u32 %v3575_v1, %v2558_v0  ;;  %v2942_v14 = vld [vmem:[#allocation5 + $0x3e8] sm:$0xf] }
  0x5e   :  { %1469 = vmatpush.bf16.msra.mxu3 %v3067_v36  ;;  %v2872_v19 = vld [vmem:[#allocation5 + $0x370] sm:$0xf0]  ;;  %v2747_v23 = vor.u32 %v3620_v15, %v2744_v17  ;;  %v3616_v27 = vld [vmem:[#allocation5 + $0x244] sm:$0xf]  ;;  %v3671_v15 = vld [vmem:[#allocation5 + $0x3f4] sm:$0xf0]  ;;  %v2687_v17 = vor.u32 %v3607_v4, %v2686_v2 }
  0x5f   :  { %1434 = vmatpush.bf16.msra.mxu2 %v2571_v41  ;;  %v3000_v21 = vld [vmem:[#allocation5 + $0x470] sm:$0xf0]  ;;  %v2875_v24 = vor.u32 %v3652_v18, %v2872_v19  ;;  %v3648_v30 = vld [vmem:[#allocation5 + $0x344] sm:$0xf]  ;;  %v3571_v18 = vld [vmem:[#allocation5 + $0xd4] sm:$0xf0] }
  0x60   :  { %1442 = vmatpush.bf16.msra.mxu0 %v2795_v46  ;;  %v3128_v26 = vld [vmem:[#allocation5 + $0x570] sm:$0xf0]  ;;  %v3003_v28 = vor.u32 %v3684_v20, %v3000_v21  ;;  %v3680_v32 = vld [vmem:[#allocation5 + $0x444] sm:$0xf]  ;;  %v2814_v20 = vld [vmem:[#allocation5 + $0x2e8] sm:$0xf] }
  0x61   :  { %1456 = vmatpush.bf16.msra.mxu1 %v2923_v47  ;;  %v2728_v29 = vld [vmem:[#allocation5 + $0x250] sm:$0xf0]  ;;  %v3131_v34 = vor.u32 %v3716_v25, %v3128_v26  ;;  %v3712_v38 = vld [vmem:[#allocation5 + $0x544] sm:$0xf]  ;;  %v3639_v21 = vld [vmem:[#allocation5 + $0x2f4] sm:$0xf0]  ;;  %v2943_v25 = vor.u32 %v3671_v15, %v2942_v14 }
  0x62   :  { %1470 = vmatpush.bf16.msra.mxu3 %v3051_v52  ;;  %1435 = vmatmul.bf16.vlgmr.msra.gmra.mxu2 %v4072_v8  ;;  %v2856_v31 = vld [vmem:[#allocation5 + $0x350] sm:$0xf0]  ;;  %v2731_v35 = vor.u32 %v3616_v27, %v2728_v29  ;;  %v3612_v40 = vld [vmem:[#allocation5 + $0x224] sm:$0xf]  ;;  %v2926_v27 = vld [vmem:[#allocation5 + $0x3c8] sm:$0xf] }
  0x63   :  { %1483 = vmatpush.bf16.msrb.mxu2 %v3195_v45  ;;  %v2984_v33 = vld [vmem:[#allocation5 + $0x450] sm:$0xf0]  ;;  %v2859_v36 = vor.u32 %v3648_v30, %v2856_v31  ;;  %v3644_v44 = vld [vmem:[#allocation5 + $0x324] sm:$0xf]  ;;  %v2526_v29 = vld [vmem:[#allocation5 + $0xa8] sm:$0xf]  ;;  %v2815_v30 = vor.u32 %v3639_v21, %v2814_v20 }
  0x64   :  { %1443 = vmatpush.bf16.msra.mxu0 %v2779_v62  ;;  %v3112_v39 = vld [vmem:[#allocation5 + $0x550] sm:$0xf0]  ;;  %v2987_v41 = vor.u32 %v3680_v32, %v2984_v33  ;;  %v3676_v46 = vld [vmem:[#allocation5 + $0x424] sm:$0xf]  ;;  %v3567_v32 = vld [vmem:[#allocation5 + $0xb4] sm:$0xf0] }
  0x65   :  { %1457 = vmatpush.bf16.msra.mxu1 %v2907_v63  ;;  %v2712_v43 = vld [vmem:[#allocation5 + $0x230] sm:$0xf0]  ;;  %v3115_v48 = vor.u32 %v3712_v38, %v3112_v39  ;;  %v3708_v49 = vld [vmem:[#allocation5 + $0x524] sm:$0xf]  ;;  %v2798_v33 = vld [vmem:[#allocation5 + $0x2c8] sm:$0xf] }
  0x66   :  { %1471 = vmatpush.bf16.msra.mxu3 %v3035_v3  ;;  %v2840_v45 = vld [vmem:[#allocation5 + $0x330] sm:$0xf0]  ;;  %v2715_v52 = vor.u32 %v3612_v40, %v2712_v43  ;;  %v3608_v56 = vld [vmem:[#allocation5 + $0x204] sm:$0xf]  ;;  %v2910_v39 = vld [vmem:[#allocation5 + $0x3a8] sm:$0xf]  ;;  %v2527_v40 = vor.u32 %v3567_v32, %v2526_v29 }
  0x67   :  { %1484 = vmatpush.bf16.msrb.mxu2 %v3179_v61  ;;  %v2968_v47 = vld [vmem:[#allocation5 + $0x430] sm:$0xf0]  ;;  %v2843_v53 = vor.u32 %v3644_v44, %v2840_v45  ;;  %v3640_v58 = vld [vmem:[#allocation5 + $0x304] sm:$0xf]  ;;  %v2510_v43 = vld [vmem:[#allocation5 + $0x88] sm:$0xf] }
  0x68   :  { %1444 = vmatpush.bf16.msra.mxu0 %v2763_v11  ;;  %v3096_v51 = vld [vmem:[#allocation5 + $0x530] sm:$0xf0]  ;;  %v2971_v59 = vor.u32 %v3676_v46, %v2968_v47  ;;  %v3672_v62 = vld [vmem:[#allocation5 + $0x404] sm:$0xf]  ;;  %v3563_v46 = vld [vmem:[#allocation5 + $0x94] sm:$0xf0] }
  0x69   :  { %1458 = vmatpush.bf16.msra.mxu1 %v2891_v12  ;;  %v2696_v57 = vld [vmem:[#allocation5 + $0x210] sm:$0xf0]  ;;  %v3099_v3 = vor.u32 %v3708_v49, %v3096_v51  ;;  %v3736_v5 = vld [vmem:[#allocation5 + $0x604] sm:$0xf]  ;;  %v2782_v47 = vld [vmem:[#allocation5 + $0x2a8] sm:$0xf] }
  0x6a   :  { %1472 = vmatpush.bf16.msra.mxu3 %v3019_v16  ;;  %v2824_v61 = vld [vmem:[#allocation5 + $0x310] sm:$0xf0]  ;;  %v2699_v7 = vor.u32 %v3608_v56, %v2696_v57  ;;  %v2542_v16 = vld [vmem:[#allocation5 + $0xc8] sm:$0xf]  ;;  %v3595_v51 = vld [vmem:[#allocation5 + $0x194] sm:$0xf0] }
  0x6b   :  { %1485 = vmatpush.bf16.msrb.mxu2 %v3163_v10  ;;  %v2952_v63 = vld [vmem:[#allocation5 + $0x410] sm:$0xf0]  ;;  %v2827_v9 = vor.u32 %v3640_v58, %v2824_v61  ;;  %v3704_v10 = vld [vmem:[#allocation5 + $0x504] sm:$0xf]  ;;  %v2543_v26 = vor.u32 %v3571_v18, %v2542_v16  ;;  %v2638_v49 = vld [vmem:[#allocation5 + $0x188] sm:$0xf] }
  0x6c   :  { %1445 = vmatpush.bf16.msra.mxu0 %v2747_v23  ;;  %v3208_v6 = vld [vmem:[#allocation5 + $0x610] sm:$0xf0]  ;;  %v2955_v12 = vor.u32 %v3672_v62, %v2952_v63  ;;  %v2670_v23 = vld [vmem:[#allocation5 + $0x1c8] sm:$0xf]  ;;  %v3659_v57 = vld [vmem:[#allocation5 + $0x394] sm:$0xf0]  ;;  %v2639_v61 = vor.u32 %v3595_v51, %v2638_v49 }
  0x6d   :  { %1459 = vmatpush.bf16.msra.mxu1 %v2875_v24  ;;  %v3080_v11 = vld [vmem:[#allocation5 + $0x510] sm:$0xf0]  ;;  %v3211_v19 = vor.u32 %v3736_v5, %v3208_v6  ;;  %v3603_v24 = vld [vmem:[#allocation5 + $0x1d4] sm:$0xf0]  ;;  %v2894_v56 = vld [vmem:[#allocation5 + $0x388] sm:$0xf] }
  0x6e   :  { %1473 = vmatpush.bf16.msra.mxu3 %v3003_v28  ;;  %v3667_v28 = vld [vmem:[#allocation5 + $0x3d4] sm:$0xf0]  ;;  %v2671_v31 = vor.u32 %v3603_v24, %v2670_v23  ;;  %v2494_v58 = vld [vmem:[#allocation5 + $0x68] sm:$0xf] }
  0x6f   :  { %1486 = vmatpush.bf16.msrb.mxu2 %v3147_v22  ;;  %v3083_v22 = vor.u32 %v3704_v10, %v3080_v11  ;;  %v2927_v38 = vor.u32 %v3667_v28, %v2926_v27  ;;  %v3559_v62 = vld [vmem:[#allocation5 + $0x74] sm:$0xf0]  ;;  %v2766_v63 = vld [vmem:[#allocation5 + $0x288] sm:$0xf] }
  0x70   :  { %1446 = vmatpush.bf16.msra.mxu0 %v2731_v35  ;;  %v2654_v35 = vld [vmem:[#allocation5 + $0x1a8] sm:$0xf]  ;;  %v3627_v0 = vld [vmem:[#allocation5 + $0x294] sm:$0xf0]  ;;  %v2495_v4 = vor.u32 %v3559_v62, %v2494_v58 }
  0x71   :  { %1460 = vmatpush.bf16.msra.mxu1 %v2859_v36  ;;  %v3599_v36 = vld [vmem:[#allocation5 + $0x1b4] sm:$0xf0]  ;;  %v2622_v1 = vld [vmem:[#allocation5 + $0x168] sm:$0xf] }
  0x72   :  { %1474 = vmatpush.bf16.msra.mxu3 %v2987_v41  ;;  %v3663_v41 = vld [vmem:[#allocation5 + $0x3b4] sm:$0xf0]  ;;  %v2655_v45 = vor.u32 %v3599_v36, %v2654_v35  ;;  %v2878_v5 = vld [vmem:[#allocation5 + $0x368] sm:$0xf] }
  0x73   :  { %1487 = vmatpush.bf16.msrb.mxu2 %v3131_v34  ;;  %v3635_v34 = vld [vmem:[#allocation5 + $0x2d4] sm:$0xf0]  ;;  %v2606_v14 = vld [vmem:[#allocation5 + $0x148] sm:$0xf] }
  0x74   :  { %1447 = vmatpush.bf16.msra.mxu0 %v2715_v52  ;;  %v2799_v44 = vor.u32 %v3635_v34, %v2798_v33  ;;  %v2911_v52 = vor.u32 %v3663_v41, %v2910_v39  ;;  %v3591_v2 = vld [vmem:[#allocation5 + $0x174] sm:$0xf0]  ;;  %v2862_v18 = vld [vmem:[#allocation5 + $0x348] sm:$0xf] }
  0x75   :  { %1461 = vmatpush.bf16.msra.mxu1 %v2843_v53  ;;  %v2511_v53 = vor.u32 %v3563_v46, %v2510_v43  ;;  %v3655_v6 = vld [vmem:[#allocation5 + $0x374] sm:$0xf0]  ;;  %v2623_v10 = vor.u32 %v3591_v2, %v2622_v1  ;;  %v2462_v20 = vld [vmem:[#allocation5 + $0x28] sm:$0xf] }
  0x76   :  { %1475 = vmatpush.bf16.msra.mxu3 %v2971_v59  ;;  %v3555_v11 = vld [vmem:[#allocation5 + $0x54] sm:$0xf0]  ;;  %v2879_v16 = vor.u32 %v3655_v6, %v2878_v5  ;;  %v2734_v24 = vld [vmem:[#allocation5 + $0x248] sm:$0xf] }
  0x77   :  { %1488 = vmatpush.bf16.msrb.mxu2 %v3115_v48  ;;  %v3631_v48 = vld [vmem:[#allocation5 + $0x2b4] sm:$0xf0]  ;;  %v2846_v29 = vld [vmem:[#allocation5 + $0x328] sm:$0xf] }
  0x78   :  { %1448 = vmatpush.bf16.msra.mxu0 %v2699_v7  ;;  %v2783_v59 = vor.u32 %v3631_v48, %v2782_v47  ;;  %v2478_v7 = vld [vmem:[#allocation5 + $0x48] sm:$0xf]  ;;  %v3587_v15 = vld [vmem:[#allocation5 + $0x154] sm:$0xf0] }
  0x79   :  { %1462 = vmatpush.bf16.msra.mxu1 %v2827_v9  ;;  %v2767_v9 = vor.u32 %v3627_v0, %v2766_v63  ;;  %v3551_v23 = vld [vmem:[#allocation5 + $0x34] sm:$0xf0]  ;;  %v2446_v32 = vld [vmem:[#allocation5 + $0x8] sm:$0xf] }
  0x7a   :  { %1476 = vmatpush.bf16.msra.mxu3 %v2955_v12  ;;  %v2750_v12 = vld [vmem:[#allocation5 + $0x268] sm:$0xf]  ;;  %v3583_v27 = vld [vmem:[#allocation5 + $0x134] sm:$0xf0] }
  0x7b   :  { %1489 = vmatpush.bf16.msrb.mxu2 %v3099_v3  ;;  %1449 = vmatmul.bf16.vlgmr.msra.gmra.mxu0 %v4064_v54  ;;  %v2895_v3 = vor.u32 %v3659_v57, %v2894_v56  ;;  %v3547_v33 = vld [vmem:[#allocation5 + $0x14] sm:$0xf0]  ;;  %v2574_v36 = vld [vmem:[#allocation5 + $0x108] sm:$0xf]  ;;  %v2560_v57 = vld [vmem:[#allocation5 + $0xf8] sm:$0xf0] }
  0x7c   :  { %1504 = vmatpush.bf16.msrb.mxu0 %v3211_v19  ;;  %1463 = vmatmul.bf16.vlgmr.msra.gmra.mxu1 %v4068_v60  ;;  %v3651_v19 = vld [vmem:[#allocation5 + $0x354] sm:$0xf0]  ;;  %v3070_v41 = vld [vmem:[#allocation5 + $0x4e8] sm:$0xf]  ;;  %v2447_v47 = vor.u32 %v3547_v33, %v2446_v32  ;;  %v3561_v33 = vld [vmem:[#allocation5 + $0x8c] sm:$0xf] }
  0x7d   :  { %1511 = vmatpush.bf16.msrb.mxu1 %v2559_v13  ;;  %1477 = vmatmul.bf16.vlgmr.msra.gmra.mxu3 %v4080_v37  ;;  %v3623_v13 = vld [vmem:[#allocation5 + $0x274] sm:$0xf0]  ;;  %v2863_v28 = vor.u32 %v3651_v19, %v2862_v18  ;;  %v2830_v48 = vld [vmem:[#allocation5 + $0x308] sm:$0xf] }
  0x7e   :  { %1525 = vmatpush.bf16.msrb.mxu3 %v2687_v17  ;;  %v2479_v17 = vor.u32 %v3555_v11, %v2478_v7  ;;  %v2751_v21 = vor.u32 %v3623_v13, %v2750_v12  ;;  %v3615_v39 = vld [vmem:[#allocation5 + $0x234] sm:$0xf0]  ;;  %v3054_v58 = vld [vmem:[#allocation5 + $0x4c8] sm:$0xf] }
  0x7f   :  { %1490 = vmatpush.bf16.msrb.mxu2 %v3083_v22  ;;  %v2607_v22 = vor.u32 %v3587_v15, %v2606_v14  ;;  %v3703_v43 = vld [vmem:[#allocation5 + $0x4f4] sm:$0xf0]  ;;  %v3182_v62 = vld [vmem:[#allocation5 + $0x5c8] sm:$0xf]  ;;  %v3605_v15 = vld [vmem:[#allocation5 + $0x1ec] sm:$0xf] }
  0x80   :  { %1539 = vmatpush.bf16.msra.mxu0 %v2815_v30  ;;  %v2463_v30 = vor.u32 %v3551_v23, %v2462_v20  ;;  %v3735_v46 = vld [vmem:[#allocation5 + $0x5f4] sm:$0xf0]  ;;  %v3071_v56 = vor.u32 %v3703_v43, %v3070_v41  ;;  %v2702_v63 = vld [vmem:[#allocation5 + $0x208] sm:$0xf]  ;;  %v2656_v41 = vld [vmem:[#allocation5 + $0x1b8] sm:$0xf0] }
  0x81   :  { %1512 = vmatpush.bf16.msrb.mxu1 %v2543_v26  ;;  %v2590_v26 = vld [vmem:[#allocation5 + $0x128] sm:$0xf]  ;;  %v3643_v49 = vld [vmem:[#allocation5 + $0x314] sm:$0xf0] }
  0x82   :  { %1526 = vmatpush.bf16.msrb.mxu3 %v2671_v31  ;;  %1491 = vmatmul.bf16.vlgmr.msrb.gmra.mxu2 %v4082_v42  ;;  %v3647_v31 = vld [vmem:[#allocation5 + $0x334] sm:$0xf0]  ;;  %v2591_v35 = vor.u32 %v3583_v27, %v2590_v26  ;;  %v2831_v1 = vor.u32 %v3643_v49, %v2830_v48  ;;  %v3038_v11 = vld [vmem:[#allocation5 + $0x4a8] sm:$0xf]  ;;  %v3601_v27 = vld [vmem:[#allocation5 + $0x1cc] sm:$0xf] }
  0x83   :  { %1553 = vmatpush.bf16.msra.mxu2 %v2943_v25  ;;  %v3619_v25 = vld [vmem:[#allocation5 + $0x254] sm:$0xf0]  ;;  %v3134_v43 = vld [vmem:[#allocation5 + $0x568] sm:$0xf]  ;;  %v2496_v48 = vld [vmem:[#allocation5 + $0x78] sm:$0xf0] }
  0x84   :  { %1540 = vmatpush.bf16.msra.mxu0 %v2799_v44  ;;  %v2735_v34 = vor.u32 %v3619_v25, %v2734_v24  ;;  %v2847_v44 = vor.u32 %v3647_v31, %v2846_v29  ;;  %v3611_v0 = vld [vmem:[#allocation5 + $0x214] sm:$0xf0]  ;;  %v3022_v24 = vld [vmem:[#allocation5 + $0x488] sm:$0xf] }
  0x85   :  { %1513 = vmatpush.bf16.msrb.mxu1 %v2527_v40  ;;  %v3579_v40 = vld [vmem:[#allocation5 + $0x114] sm:$0xf0]  ;;  %v2703_v7 = vor.u32 %v3611_v0, %v2702_v63  ;;  %v3150_v29 = vld [vmem:[#allocation5 + $0x588] sm:$0xf]  ;;  %v3553_v63 = vld [vmem:[#allocation5 + $0x4c] sm:$0xf] }
  0x86   :  { %1527 = vmatpush.bf16.msrb.mxu3 %v2655_v45  ;;  %v3198_v45 = vld [vmem:[#allocation5 + $0x5e8] sm:$0xf]  ;;  %v3731_v2 = vld [vmem:[#allocation5 + $0x5d4] sm:$0xf0]  ;;  %v2480_v0 = vld [vmem:[#allocation5 + $0x58] sm:$0xf0] }
  0x87   :  { %1554 = vmatpush.bf16.msra.mxu2 %v2927_v38  ;;  %v2718_v38 = vld [vmem:[#allocation5 + $0x228] sm:$0xf]  ;;  %v3183_v12 = vor.u32 %v3731_v2, %v3182_v62  ;;  %v3695_v13 = vld [vmem:[#allocation5 + $0x4b4] sm:$0xf0] }
  0x88   :  { %1541 = vmatpush.bf16.msra.mxu0 %v2783_v59  ;;  %v2719_v51 = vor.u32 %v3615_v39, %v2718_v38  ;;  %v3699_v59 = vld [vmem:[#allocation5 + $0x4d4] sm:$0xf0]  ;;  %v3039_v20 = vor.u32 %v3695_v13, %v3038_v11  ;;  %v2974_v2 = vld [vmem:[#allocation5 + $0x428] sm:$0xf]  ;;  %v3549_v11 = vld [vmem:[#allocation5 + $0x2c] sm:$0xf] }
  0x89   :  { %1514 = vmatpush.bf16.msrb.mxu1 %v2511_v53  ;;  %v2575_v53 = vor.u32 %v3579_v40, %v2574_v36  ;;  %v3055_v6 = vor.u32 %v3699_v59, %v3054_v58  ;;  %v3727_v18 = vld [vmem:[#allocation5 + $0x5b4] sm:$0xf0]  ;;  %v3006_v36 = vld [vmem:[#allocation5 + $0x468] sm:$0xf]  ;;  %v3597_v40 = vld [vmem:[#allocation5 + $0x1ac] sm:$0xf] }
  0x8a   :  { %1528 = vmatpush.bf16.msrb.mxu3 %v2639_v61  ;;  %v3199_v61 = vor.u32 %v3735_v46, %v3198_v45  ;;  %v3691_v26 = vld [vmem:[#allocation5 + $0x494] sm:$0xf0]  ;;  %v2659_v49 = vor.u32 %v3597_v40, %v2656_v41  ;;  %v3118_v58 = vld [vmem:[#allocation5 + $0x548] sm:$0xf]  ;;  %v2464_v13 = vld [vmem:[#allocation5 + $0x38] sm:$0xf0] }
  0x8b   :  { %1555 = vmatpush.bf16.msra.mxu2 %v2911_v52  ;;  %3221 = vmatmul.msk.bf16.vlgmr.msrb.gmra.mxu0 %vm1311_vm0, %v4076_v50  ;;  %v3573_v52 = vld [vmem:[#allocation5 + $0xec] sm:$0xf]  ;;  %v3023_v32 = vor.u32 %v3691_v26, %v3022_v24  ;;  %v3687_v39 = vld [vmem:[#allocation5 + $0x474] sm:$0xf0]  ;;  %v2467_v24 = vor.u32 %v3549_v11, %v2464_v13  ;;  %v2944_v26 = vld [vmem:[#allocation5 + $0x3f8] sm:$0xf0] }
  0x8c   :  { %1542 = vmatpush.bf16.msra.mxu0 %v2767_v9  ;;  %v2563_v5 = vor.u32 %v3573_v52, %v2560_v57  ;;  %v3569_v9 = vld [vmem:[#allocation5 + $0xcc] sm:$0xf]  ;;  %v3007_v46 = vor.u32 %v3687_v39, %v3006_v36  ;;  %v2640_v57 = vld [vmem:[#allocation5 + $0x198] sm:$0xf0]  ;;  %v3715_v59 = vld [vmem:[#allocation5 + $0x554] sm:$0xf0] }
  0x8d   :  { %1515 = vmatpush.bf16.msrb.mxu1 %v2495_v4  ;;  %v3739_v4 = vld [vmem:[#allocation5 + $0x614] sm:$0xf0]  ;;  %v3581_v39 = vld [vmem:[#allocation5 + $0x12c] sm:$0xf]  ;;  %v2592_v40 = vld [vmem:[#allocation5 + $0x138] sm:$0xf0] }
  0x8e   :  { %1529 = vmatpush.bf16.msrb.mxu3 %v2623_v10  ;;  %v2544_v10 = vld [vmem:[#allocation5 + $0xd8] sm:$0xf0]  ;;  %v3729_v11 = vld [vmem:[#allocation5 + $0x5cc] sm:$0xf] }
  0x8f   :  { %1556 = vmatpush.bf16.msra.mxu2 %v2895_v3  ;;  %v3214_v3 = vld [vmem:[#allocation5 + $0x608] sm:$0xf]  ;;  %v2547_v19 = vor.u32 %v3569_v9, %v2544_v10  ;;  %v3711_v9 = vld [vmem:[#allocation5 + $0x534] sm:$0xf0]  ;;  %v2483_v10 = vor.u32 %v3553_v63, %v2480_v0 }
  0x90   :  { %1543 = vmatpush.bf16.msra.mxu0 %v2751_v21  ;;  %v3215_v14 = vor.u32 %v3739_v4, %v3214_v3  ;;  %v3565_v21 = vld [vmem:[#allocation5 + $0xac] sm:$0xf]  ;;  %v3119_v3 = vor.u32 %v3715_v59, %v3118_v58  ;;  %v3679_v4 = vld [vmem:[#allocation5 + $0x434] sm:$0xf0]  ;;  %v2576_v58 = vld [vmem:[#allocation5 + $0x118] sm:$0xf0] }
  0x91   :  { %1516 = vmatpush.bf16.msrb.mxu1 %v2479_v17  ;;  %v3166_v17 = vld [vmem:[#allocation5 + $0x5a8] sm:$0xf]  ;;  %v2912_v59 = vld [vmem:[#allocation5 + $0x3b8] sm:$0xf0] }
  0x92   :  { %1530 = vmatpush.bf16.msrb.mxu3 %v2607_v22  ;;  %v2528_v22 = vld [vmem:[#allocation5 + $0xb8] sm:$0xf0]  ;;  %v3167_v25 = vor.u32 %v3727_v18, %v3166_v17  ;;  %v3086_v18 = vld [vmem:[#allocation5 + $0x508] sm:$0xf] }
  0x93   :  { %1557 = vmatpush.bf16.msra.mxu2 %v2879_v16  ;;  %v2688_v16 = vld [vmem:[#allocation5 + $0x1f8] sm:$0xf0]  ;;  %v2531_v31 = vor.u32 %v3565_v21, %v2528_v22  ;;  %v3707_v21 = vld [vmem:[#allocation5 + $0x514] sm:$0xf0]  ;;  %v3637_v22 = vld [vmem:[#allocation5 + $0x2ec] sm:$0xf] }
  0x94   :  { %1544 = vmatpush.bf16.msra.mxu0 %v2735_v34  ;;  %v2691_v23 = vor.u32 %v3605_v15, %v2688_v16  ;;  %v2512_v34 = vld [vmem:[#allocation5 + $0x98] sm:$0xf0]  ;;  %v2958_v15 = vld [vmem:[#allocation5 + $0x408] sm:$0xf]  ;;  %v3675_v16 = vld [vmem:[#allocation5 + $0x414] sm:$0xf0] }
  0x95   :  { %1517 = vmatpush.bf16.msrb.mxu1 %v2463_v30  ;;  %v3723_v30 = vld [vmem:[#allocation5 + $0x594] sm:$0xf0]  ;;  %v2515_v45 = vor.u32 %v3561_v33, %v2512_v34  ;;  %v3701_v33 = vld [vmem:[#allocation5 + $0x4ec] sm:$0xf]  ;;  %v3072_v34 = vld [vmem:[#allocation5 + $0x4f8] sm:$0xf0] }
  0x96   :  { %1531 = vmatpush.bf16.msrb.mxu3 %v2591_v35  ;;  %v3151_v38 = vor.u32 %v3723_v30, %v3150_v29  ;;  %v2448_v29 = vld [vmem:[#allocation5 + $0x18] sm:$0xf0] }
  0x97   :  { %1558 = vmatpush.bf16.msra.mxu2 %v2863_v28  ;;  %v2672_v28 = vld [vmem:[#allocation5 + $0x1d8] sm:$0xf0] }
  0x98   :  { %1545 = vmatpush.bf16.msra.mxu0 %v2719_v51  ;;  %v2675_v35 = vor.u32 %v3601_v27, %v2672_v28  ;;  %v2990_v51 = vld [vmem:[#allocation5 + $0x448] sm:$0xf]  ;;  %v2959_v27 = vor.u32 %v3675_v16, %v2958_v15  ;;  %v3545_v28 = vld [vmem:[#allocation5 + $0xc] sm:$0xf]  ;;  %v3024_v16 = vld [vmem:[#allocation5 + $0x498] sm:$0xf0] }
  0x99   :  { %1518 = vmatpush.bf16.msrb.mxu1 %v2447_v47  ;;  %v3557_v47 = vld [vmem:[#allocation5 + $0x6c] sm:$0xf]  ;;  %v2451_v41 = vor.u32 %v3545_v28, %v2448_v29 }
  0x9a   :  { %1532 = vmatpush.bf16.msrb.mxu3 %v2575_v53  ;;  %v3683_v53 = vld [vmem:[#allocation5 + $0x454] sm:$0xf0]  ;;  %v3689_v15 = vld [vmem:[#allocation5 + $0x48c] sm:$0xf] }
  0x9b   :  { %1559 = vmatpush.bf16.msra.mxu2 %v2847_v44  ;;  %v3719_v44 = vld [vmem:[#allocation5 + $0x574] sm:$0xf0]  ;;  %v2991_v62 = vor.u32 %v3683_v53, %v2990_v51  ;;  %v3629_v51 = vld [vmem:[#allocation5 + $0x2ac] sm:$0xf] }
  0x9c   :  { %1519 = vmatmul.bf16.vlgmr.msrb.gmra.mxu1 %v4066_v55  ;;  %1546 = vmatpush.bf16.msra.mxu0 %v2703_v7  ;;  %v3135_v52 = vor.u32 %v3719_v44, %v3134_v43  ;;  %v3102_v7 = vld [vmem:[#allocation5 + $0x528] sm:$0xf]  ;;  %v3665_v43 = vld [vmem:[#allocation5 + $0x3cc] sm:$0xf]  ;;  %v2928_v44 = vld [vmem:[#allocation5 + $0x3d8] sm:$0xf0] }
  0x9d   :  { %1567 = vmatpush.bf16.msra.mxu1 %v3071_v56  ;;  %1533 = vmatmul.bf16.vlgmr.msrb.gmra.mxu3 %v4072_v8  ;;  %v3593_v56 = vld [vmem:[#allocation5 + $0x18c] sm:$0xf]  ;;  %v3103_v17 = vor.u32 %v3711_v9, %v3102_v7  ;;  %v2931_v53 = vor.u32 %v3665_v43, %v2928_v44  ;;  %v2768_v7 = vld [vmem:[#allocation5 + $0x298] sm:$0xf0] }
  0x9e   :  { %1581 = vmatpush.bf16.msra.mxu3 %v3199_v61  ;;  %v2499_v61 = vor.u32 %v3557_v47, %v2496_v48  ;;  %v2595_v48 = vor.u32 %v3581_v39, %v2592_v40  ;;  %v3657_v9 = vld [vmem:[#allocation5 + $0x38c] sm:$0xf]  ;;  %v2992_v40 = vld [vmem:[#allocation5 + $0x458] sm:$0xf0] }
  0x9f   :  { %1560 = vmatpush.bf16.msra.mxu2 %v2831_v1  ;;  %1547 = vmatmul.bf16.vlgmr.msra.gmra.mxu0 %v4064_v54  ;;  %v2643_v1 = vor.u32 %v3593_v56, %v2640_v57  ;;  %v3661_v56 = vld [vmem:[#allocation5 + $0x3ac] sm:$0xf] }
  0xa0   :  { %1602 = vmatpush.bf16.msrb.mxu0 %v3215_v14  ;;  %v3577_v57 = vld [vmem:[#allocation5 + $0x10c] sm:$0xf] }
  0xa1   :  { %1568 = vmatpush.bf16.msra.mxu1 %v3055_v6  ;;  %v2624_v6 = vld [vmem:[#allocation5 + $0x178] sm:$0xf0]  ;;  %v3681_v39 = vld [vmem:[#allocation5 + $0x44c] sm:$0xf] }
  0xa2   :  { %1582 = vmatpush.bf16.msra.mxu3 %v3183_v12  ;;  %1561 = vmatmul.bf16.vlgmr.msra.gmra.mxu2 %v4068_v60  ;;  %v2975_v12 = vor.u32 %v3679_v4, %v2974_v2  ;;  %v3693_v2 = vld [vmem:[#allocation5 + $0x4ac] sm:$0xf]  ;;  %v2915_v4 = vor.u32 %v3661_v56, %v2912_v59 }
  0xa3   :  { %1609 = vmatpush.bf16.msrb.mxu2 %v2563_v5  ;;  %v3589_v5 = vld [vmem:[#allocation5 + $0x16c] sm:$0xf] }
  0xa4   :  { %1623 = vmatpush.bf16.msra.mxu0 %v2691_v23  ;;  %v2627_v14 = vor.u32 %v3589_v5, %v2624_v6  ;;  %v2816_v23 = vld [vmem:[#allocation5 + $0x2f8] sm:$0xf0]  ;;  %v3625_v6 = vld [vmem:[#allocation5 + $0x28c] sm:$0xf] }
  0xa5   :  { %1569 = vmatpush.bf16.msra.mxu1 %v3039_v20  ;;  %v2608_v20 = vld [vmem:[#allocation5 + $0x158] sm:$0xf0]  ;;  %v3613_v44 = vld [vmem:[#allocation5 + $0x22c] sm:$0xf] }
  0xa6   :  { %1583 = vmatpush.bf16.msra.mxu3 %v3167_v25  ;;  %v3669_v25 = vld [vmem:[#allocation5 + $0x3ec] sm:$0xf] }
  0xa7   :  { %1610 = vmatpush.bf16.msrb.mxu2 %v2547_v19  ;;  %v3585_v19 = vld [vmem:[#allocation5 + $0x14c] sm:$0xf]  ;;  %v2947_v36 = vor.u32 %v3669_v25, %v2944_v26 }
  0xa8   :  { %1624 = vmatpush.bf16.msra.mxu0 %v2675_v35  ;;  %v2611_v30 = vor.u32 %v3585_v19, %v2608_v20  ;;  %v3633_v35 = vld [vmem:[#allocation5 + $0x2cc] sm:$0xf] }
  0xa9   :  { %1570 = vmatpush.bf16.msra.mxu1 %v3023_v32  ;;  %v2819_v32 = vor.u32 %v3637_v22, %v2816_v23  ;;  %v3621_v19 = vld [vmem:[#allocation5 + $0x26c] sm:$0xf]  ;;  %v3168_v23 = vld [vmem:[#allocation5 + $0x5b8] sm:$0xf0] }
  0xaa   :  { %1584 = vmatpush.bf16.msra.mxu3 %v3151_v38  ;;  %v2800_v38 = vld [vmem:[#allocation5 + $0x2d8] sm:$0xf0]  ;;  %v3653_v20 = vld [vmem:[#allocation5 + $0x36c] sm:$0xf] }
  0xab   :  { %1611 = vmatpush.bf16.msrb.mxu2 %v2531_v31  ;;  %v3087_v31 = vor.u32 %v3707_v21, %v3086_v18  ;;  %v2803_v47 = vor.u32 %v3633_v35, %v2800_v38  ;;  %v2880_v21 = vld [vmem:[#allocation5 + $0x378] sm:$0xf0]  ;;  %v3725_v22 = vld [vmem:[#allocation5 + $0x5ac] sm:$0xf]  ;;  %v4104_v38 = vld [vmem:[#allocation7] sm:$0xf] }
  0xac   :  { %1625 = vmatpush.bf16.msra.mxu0 %v2659_v49  ;;  %v3056_v49 = vld [vmem:[#allocation5 + $0x4d8] sm:$0xf0]  ;;  %v3685_v26 = vld [vmem:[#allocation5 + $0x46c] sm:$0xf]  ;;  %v2883_v28 = vor.u32 %v3653_v20, %v2880_v21  ;;  %v3171_v29 = vor.u32 %v3725_v22, %v3168_v23 }
  0xad   :  { %1571 = vmatpush.bf16.msra.mxu1 %v3007_v46  ;;  %v3697_v46 = vld [vmem:[#allocation5 + $0x4cc] sm:$0xf]  ;;  %v3152_v35 = vld [vmem:[#allocation5 + $0x598] sm:$0xf0] }
  0xae   :  { %1585 = vmatpush.bf16.msra.mxu3 %v3135_v52  ;;  %v2784_v52 = vld [vmem:[#allocation5 + $0x2b8] sm:$0xf0]  ;;  %v3059_v63 = vor.u32 %v3697_v46, %v3056_v49  ;;  %v3645_v46 = vld [vmem:[#allocation5 + $0x32c] sm:$0xf] }
  0xaf   :  { %1612 = vmatpush.bf16.msrb.mxu2 %v2515_v45  ;;  %3222 = vmatmul.msk.bf16.vlgmr.msrb.gmra.mxu0 %vm1311_vm0, %v4076_v50  ;;  %v3075_v45 = vor.u32 %v3701_v33, %v3072_v34  ;;  %v2787_v0 = vor.u32 %v3629_v51, %v2784_v52  ;;  %v2864_v33 = vld [vmem:[#allocation5 + $0x358] sm:$0xf0]  ;;  %v3721_v34 = vld [vmem:[#allocation5 + $0x58c] sm:$0xf]  ;;  %v2995_v51 = vor.u32 %v3681_v39, %v2992_v40  ;;  %v323_v52 = vperm.slane %v4104_v38, 0 }
  0xb0   :  { %1626 = vmatpush.bf16.msra.mxu0 %v2643_v1  ;;  %v2579_v1 = vor.u32 %v3577_v57, %v2576_v58  ;;  %v3155_v43 = vor.u32 %v3721_v34, %v3152_v35  ;;  %v3136_v49 = vld [vmem:[#allocation5 + $0x578] sm:$0xf0]  ;;  %v3677_v56 = vld [vmem:[#allocation5 + $0x42c] sm:$0xf]  ;;  %v3266_v35 = vld [vmem:[#allocation8 + $0x50] sm:$0xf] }
  0xb1   :  { %1572 = vmatpush.bf16.msra.mxu1 %v2991_v62  ;;  %v3200_v62 = vld [vmem:[#allocation5 + $0x5f8] sm:$0xf0]  ;;  %v3709_v20 = vld [vmem:[#allocation5 + $0x52c] sm:$0xf]  ;;  %v3330_v40 = vld [vmem:[#allocation8 + $0xd0] sm:$0xf] }
  0xb2   :  { %1586 = vmatpush.bf16.msra.mxu3 %v3119_v3  ;;  %v3040_v3 = vld [vmem:[#allocation5 + $0x4b8] sm:$0xf0] }
  0xb3   :  { %1613 = vmatpush.bf16.msrb.mxu2 %v2499_v61  ;;  %v3733_v61 = vld [vmem:[#allocation5 + $0x5ec] sm:$0xf]  ;;  %v3043_v13 = vor.u32 %v3693_v2, %v3040_v3  ;;  %v2976_v57 = vld [vmem:[#allocation5 + $0x438] sm:$0xf0] }
  0xb4   :  { %1627 = vmatpush.bf16.msra.mxu0 %v2627_v14  ;;  %v3203_v5 = vor.u32 %v3733_v61, %v3200_v62  ;;  %v2771_v14 = vor.u32 %v3625_v6, %v2768_v7  ;;  %v3609_v62 = vld [vmem:[#allocation5 + $0x20c] sm:$0xf]  ;;  %v2832_v2 = vld [vmem:[#allocation5 + $0x318] sm:$0xf0]  ;;  %v2979_v6 = vor.u32 %v3677_v56, %v2976_v57  ;;  %v3282_v7 = vld [vmem:[#allocation8 + $0x70] sm:$0xf] }
  0xb5   :  { %1573 = vmatpush.bf16.msra.mxu1 %v2975_v12  ;;  %v3184_v12 = vld [vmem:[#allocation5 + $0x5d8] sm:$0xf0]  ;;  %v3713_v3 = vld [vmem:[#allocation5 + $0x54c] sm:$0xf] }
  0xb6   :  { %1587 = vmatpush.bf16.msra.mxu3 %v3103_v17  ;;  %v3187_v18 = vor.u32 %v3729_v11, %v3184_v12  ;;  %v3673_v12 = vld [vmem:[#allocation5 + $0x40c] sm:$0xf]  ;;  %v3104_v21 = vld [vmem:[#allocation5 + $0x538] sm:$0xf0] }
  0xb7   :  { %1614 = vmatpush.bf16.msrb.mxu2 %v2483_v10  ;;  %v2896_v10 = vld [vmem:[#allocation5 + $0x398] sm:$0xf0] }
  0xb8   :  { %1628 = vmatpush.bf16.msra.mxu0 %v2611_v30  ;;  %v2899_v17 = vor.u32 %v3657_v9, %v2896_v10  ;;  %v3617_v30 = vld [vmem:[#allocation5 + $0x24c] sm:$0xf]  ;;  %v3755_v9 = vld [vmem:[#allocation8 + $0x74] sm:$0xf0]  ;;  %v3346_v10 = vld [vmem:[#allocation8 + $0xf0] sm:$0xf] }
  0xb9   :  { %1574 = vmatpush.bf16.msra.mxu1 %v2959_v27  ;;  %v3008_v27 = vld [vmem:[#allocation5 + $0x478] sm:$0xf0] }
  0xba   :  { %1588 = vmatpush.bf16.msra.mxu3 %v3087_v31  ;;  %v2736_v31 = vld [vmem:[#allocation5 + $0x258] sm:$0xf0] }
  0xbb   :  { %1615 = vmatpush.bf16.msrb.mxu2 %v2467_v24  ;;  %v3027_v24 = vor.u32 %v3689_v15, %v3024_v16  ;;  %v1324_v58 = vpop.f32.mrf.mxu0 }
  0xbc   :  { %1575 = vmatmul.bf16.vlgmr.msra.gmra.mxu1 %v4080_v37  ;;  %1629 = vmatpush.bf16.msra.mxu0 %v2595_v48  ;;  %v3717_v48 = vld [vmem:[#allocation5 + $0x56c] sm:$0xf] }
  0xbd   :  { %1637 = vmatpush.bf16.msrb.mxu1 %v2819_v32  ;;  %1589 = vmatmul.bf16.vlgmr.msra.gmra.mxu3 %v4082_v42  ;;  %v3649_v32 = vld [vmem:[#allocation5 + $0x34c] sm:$0xf]  ;;  %v3139_v61 = vor.u32 %v3717_v48, %v3136_v49  ;;  %v3258_v48 = vld [vmem:[#allocation8 + $0x40] sm:$0xf] }
  0xbe   :  { %1651 = vmatpush.bf16.msrb.mxu3 %v2947_v36  ;;  %v3011_v36 = vor.u32 %v3685_v26, %v3008_v27  ;;  %v3338_v27 = vld [vmem:[#allocation8 + $0xe0] sm:$0xf]  ;;  %v3749_v49 = vld [vmem:[#allocation8 + $0x44] sm:$0xf0] }
  0xbf   :  { %1616 = vmatpush.bf16.msrb.mxu2 %v2451_v41  ;;  %v2867_v41 = vor.u32 %v3649_v32, %v2864_v33  ;;  %v3705_v32 = vld [vmem:[#allocation5 + $0x50c] sm:$0xf]  ;;  %v3088_v33 = vld [vmem:[#allocation5 + $0x518] sm:$0xf0] }
  0xc0   :  { %1630 = vmatpush.bf16.msra.mxu0 %v2579_v1  ;;  %v1338_v1 = vpop.f32.mrf.mxu1 }
  0xc1   :  { %1638 = vmatpush.bf16.msrb.mxu1 %v2803_v47  ;;  %v2848_v47 = vld [vmem:[#allocation5 + $0x338] sm:$0xf0] }
  0xc2   :  { %1652 = vmatpush.bf16.msrb.mxu3 %v2931_v53  ;;  %1617 = vmatmul.bf16.vlgmr.msrb.gmra.mxu2 %v4066_v55  ;;  %v2752_v55 = vld [vmem:[#allocation5 + $0x278] sm:$0xf0]  ;;  %v2851_v59 = vor.u32 %v3645_v46, %v2848_v47 }
  0xc3   :  { %1665 = vmatpush.bf16.msra.mxu2 %v3075_v45  ;;  %1631 = vmatmul.bf16.vlgmr.msra.gmra.mxu0 %v4072_v8  ;;  %v2755_v25 = vor.u32 %v3621_v19, %v2752_v55  ;;  %v2739_v8 = vor.u32 %v3617_v30, %v2736_v31  ;;  %v2720_v45 = vld [vmem:[#allocation5 + $0x238] sm:$0xf0]  ;;  %v1325_v19 = vadd.f32 %v1324_v58, %v323_v52  ;;  %v1326_v34 = vpop.f32.mrf.mxu0 }
  0xc4   :  { %1679 = vmatpush.bf16.msrb.mxu0 %v3203_v5  ;;  %v2723_v53 = vor.u32 %v3613_v44, %v2720_v45  ;;  %v1352_v5 = vpop.f32.mrf.mxu2  ;;  %v3283_v55 = vor.u32 %v3755_v9, %v3282_v7  ;;  %v3091_v45 = vor.u32 %v3705_v32, %v3088_v33  ;;  %v1327_v47 = vadd.f32 %v1326_v34, %v323_v52  ;;  %v3745_v7 = vld [vmem:[#allocation8 + $0x24] sm:$0xf0]  ;;  %v3290_v32 = vld [vmem:[#allocation8 + $0x80] sm:$0xf]  ;;  %v3770_v34 = vld [vmem:[#allocation8 + $0xf4] sm:$0xf] }
  0xc5   :  { %1639 = vmatpush.bf16.msrb.mxu1 %v2787_v0  ;;  %v3641_v0 = vld [vmem:[#allocation5 + $0x30c] sm:$0xf]  ;;  %v1339_v30 = vadd.f32 %v1338_v1, %v1325_v19  ;;  %v3259_v58 = vor.u32 %v3749_v49, %v3258_v48  ;;  %v3763_v1 = vld [vmem:[#allocation8 + $0xb4] sm:$0xf0]  ;;  %v3340_v48 = vld [vmem:[#allocation8 + $0xe8] sm:$0xf0] }
  0xc6   :  { %1653 = vmatpush.bf16.msrb.mxu3 %v2915_v4  ;;  %v3120_v4 = vld [vmem:[#allocation5 + $0x558] sm:$0xf0]  ;;  %v2835_v15 = vor.u32 %v3641_v0, %v2832_v2  ;;  %v3757_v33 = vld [vmem:[#allocation8 + $0x84] sm:$0xf0] }
  0xc7   :  { %1666 = vmatpush.bf16.msra.mxu2 %v3059_v63  ;;  %v2704_v63 = vld [vmem:[#allocation5 + $0x218] sm:$0xf0]  ;;  %v3123_v16 = vor.u32 %v3713_v3, %v3120_v4  ;;  %v1353_v46 = vadd.f32 %v1352_v5, %v1339_v30 }
  0xc8   :  { %1680 = vmatpush.bf16.msrb.mxu0 %v3187_v18  ;;  %v2707_v11 = vor.u32 %v3609_v62, %v2704_v63  ;;  %v3216_v18 = vld [vmem:[#allocation5 + $0x618] sm:$0xf0]  ;;  %v1340_v39 = vpop.f32.mrf.mxu1 }
  0xc9   :  { %1640 = vmatpush.bf16.msrb.mxu1 %v2771_v14  ;;  %v3771_v14 = vld [vmem:[#allocation8 + $0xf4] sm:$0xf0]  ;;  %v1341_v57 = vadd.f32 %v1340_v39, %v1327_v47  ;;  %v3291_v39 = vor.u32 %v3757_v33, %v3290_v32  ;;  %v3758_v32 = vld [vmem:[#allocation8 + $0x94] sm:$0xf]  ;;  %v3300_v33 = vld [vmem:[#allocation8 + $0x98] sm:$0xf0] }
  0xca   :  { %1654 = vmatpush.bf16.msrb.mxu3 %v2899_v17  ;;  %v3737_v17 = vld [vmem:[#allocation5 + $0x60c] sm:$0xf]  ;;  %v3347_v22 = vor.u32 %v3771_v14, %v3346_v10  ;;  %v3747_v62 = vld [vmem:[#allocation8 + $0x34] sm:$0xf0] }
  0xcb   :  { %1667 = vmatpush.bf16.msra.mxu2 %v3043_v13  ;;  %v2960_v13 = vld [vmem:[#allocation5 + $0x418] sm:$0xf0]  ;;  %v3219_v26 = vor.u32 %v3737_v17, %v3216_v18 }
  0xcc   :  { %1681 = vmatpush.bf16.msrb.mxu0 %v3171_v29  ;;  %v2963_v23 = vor.u32 %v3673_v12, %v2960_v13  ;;  %v3107_v29 = vor.u32 %v3709_v20, %v3104_v21  ;;  %v1354_v44 = vpop.f32.mrf.mxu2  ;;  %v3761_v12 = vld [vmem:[#allocation8 + $0xa4] sm:$0xf0]  ;;  %v3298_v20 = vld [vmem:[#allocation8 + $0x90] sm:$0xf]  ;;  %v3759_v21 = vld [vmem:[#allocation8 + $0x94] sm:$0xf0] }
  0xcd   :  { %1641 = vmatpush.bf16.msrb.mxu1 %v2755_v25  ;;  %v3753_v25 = vld [vmem:[#allocation8 + $0x64] sm:$0xf0]  ;;  %v1355_v3 = vadd.f32 %v1354_v44, %v1341_v57  ;;  %v3752_v44 = vld [vmem:[#allocation8 + $0x64] sm:$0xf]  ;;  %v3766_v57 = vld [vmem:[#allocation8 + $0xd4] sm:$0xf] }
  0xce   :  { %1655 = vmatpush.bf16.msrb.mxu3 %v2883_v28  ;;  %v3769_v28 = vld [vmem:[#allocation8 + $0xe4] sm:$0xf0] }
  0xcf   :  { %1668 = vmatpush.bf16.msra.mxu2 %v3027_v24  ;;  %v3274_v24 = vld [vmem:[#allocation8 + $0x60] sm:$0xf] }
  0xd0   :  { %1682 = vmatpush.bf16.msrb.mxu0 %v3155_v43  ;;  %v3275_v31 = vor.u32 %v3753_v25, %v3274_v24  ;;  %v1366_v43 = vpop.f32.mrf.mxu3  ;;  %v3226_v24 = vld [vmem:[#allocation8] sm:$0xf] }
  0xd1   :  { %1642 = vmatpush.bf16.msrb.mxu1 %v2739_v8  ;;  %v3339_v8 = vor.u32 %v3769_v28, %v3338_v27  ;;  %v1367_v56 = vadd.f32 %v1366_v43, %v1353_v46  ;;  %v3754_v27 = vld [vmem:[#allocation8 + $0x74] sm:$0xf]  ;;  %v3284_v28 = vld [vmem:[#allocation8 + $0x78] sm:$0xf0] }
  0xd2   :  { %1656 = vmatpush.bf16.msrb.mxu3 %v2867_v41  ;;  %v3767_v41 = vld [vmem:[#allocation8 + $0xd4] sm:$0xf0] }
  0xd3   :  { %1669 = vmatpush.bf16.msra.mxu2 %v3011_v36  ;;  %v3751_v36 = vld [vmem:[#allocation8 + $0x54] sm:$0xf0] }
  0xd4   :  { %1683 = vmatpush.bf16.msrb.mxu0 %v3139_v61  ;;  %v3250_v61 = vld [vmem:[#allocation8 + $0x30] sm:$0xf]  ;;  %v1408_v2 = vpop.f32.mrf.mxu2 }
  0xd5   :  { %1643 = vmatpush.bf16.msrb.mxu1 %v2723_v53  ;;  %v3765_v53 = vld [vmem:[#allocation8 + $0xc4] sm:$0xf0]  ;;  %v3251_v4 = vor.u32 %v3747_v62, %v3250_v61  ;;  %v3748_v62 = vld [vmem:[#allocation8 + $0x44] sm:$0xf] }
  0xd6   :  { %1657 = vmatpush.bf16.msrb.mxu3 %v2851_v59 }
  0xd7   :  { %1670 = vmatpush.bf16.msra.mxu2 %v2995_v51  ;;  %v3331_v51 = vor.u32 %v3767_v41, %v3330_v40 }
  0xd8   :  { %1684 = vmatpush.bf16.msrb.mxu0 %v3123_v16  ;;  %v1380_v59 = vpop.f32.mrf.mxu0  ;;  %v1368_v5 = vpop.f32.mrf.mxu3  ;;  %v3234_v16 = vld [vmem:[#allocation8 + $0x10] sm:$0xf] }
  0xd9   :  { %1644 = vmatpush.bf16.msrb.mxu1 %v2707_v11  ;;  %v1381_v63 = vadd.f32 %v1380_v59, %v1367_v56  ;;  %v1394_v0 = vpop.f32.mrf.mxu1  ;;  %v3306_v11 = vld [vmem:[#allocation8 + $0xa0] sm:$0xf]  ;;  %v1369_v13 = vadd.f32 %v1368_v5, %v1355_v3  ;;  %v324_v59 = vperm.slane %v4104_v38, 1  ;;  %v3252_v5 = vld [vmem:[#allocation8 + $0x38] sm:$0xf0] }
  0xda   :  { %1658 = vmatpush.bf16.msrb.mxu3 %v2835_v15  ;;  %v3307_v17 = vor.u32 %v3761_v12, %v3306_v11  ;;  %v3316_v11 = vld [vmem:[#allocation8 + $0xb8] sm:$0xf0] }
  0xdb   :  { %1671 = vmatpush.bf16.msra.mxu2 %v2979_v6  ;;  %v3242_v6 = vld [vmem:[#allocation8 + $0x20] sm:$0xf]  ;;  %v1395_v10 = vadd.f32 %v1394_v0, %v1381_v63  ;;  %v3764_v0 = vld [vmem:[#allocation8 + $0xc4] sm:$0xf] }
  0xdc   :  { %1645 = vmatmul.bf16.vlgmr.msrb.gmra.mxu1 %v4064_v54  ;;  %1685 = vmatpush.bf16.msrb.mxu0 %v3107_v29  ;;  %v3267_v54 = vor.u32 %v3751_v36, %v3266_v35  ;;  %v3243_v14 = vor.u32 %v3745_v7, %v3242_v6  ;;  %v1410_v25 = vpop.f32.mrf.mxu2  ;;  %v3299_v29 = vor.u32 %v3759_v21, %v3298_v20  ;;  %v3348_v35 = vld [vmem:[#allocation8 + $0xf8] sm:$0xf0]  ;;  %v3760_v20 = vld [vmem:[#allocation8 + $0xa4] sm:$0xf]  ;;  %v3308_v21 = vld [vmem:[#allocation8 + $0xa8] sm:$0xf0] }
  0xdd   :  { %2139 = vmatpush.bf16.msra.mxu1 %v3347_v22  ;;  %1659 = vmatmul.bf16.vlgmr.msrb.gmra.mxu3 %v4068_v60  ;;  %v3322_v60 = vld [vmem:[#allocation8 + $0xc0] sm:$0xf]  ;;  %v1409_v18 = vadd.f32 %v1408_v2, %v1395_v10  ;;  %v3351_v46 = vor.u32 %v3770_v34, %v3348_v35  ;;  %v3762_v10 = vld [vmem:[#allocation8 + $0xb4] sm:$0xf] }
  0xde   :  { %2125 = vmatpush.bf16.msra.mxu3 %v3283_v55  ;;  %v3323_v52 = vor.u32 %v3765_v53, %v3322_v60  ;;  %v3750_v60 = vld [vmem:[#allocation8 + $0x54] sm:$0xf]  ;;  %v3268_v53 = vld [vmem:[#allocation8 + $0x58] sm:$0xf0] }
  0xdf   :  { %1672 = vmatpush.bf16.msra.mxu2 %v2963_v23  ;;  %v1715_v30 = vmul.f32 0.2, %v1409_v18  ;;  %vm1707_vm1 = vcmp.gt.f32.partialorder %v1409_v18, 0.0  ;;  %v3271_v61 = vor.u32 %v3750_v60, %v3268_v53 }
  0xe0   :  { %1686 = vmatpush.bf16.msrb.mxu0 %v3091_v45  ;;  %v1382_v15 = vpop.f32.mrf.mxu0  ;;  %v1422_v43 = vpop.f32.mrf.mxu3  ;;  %v3276_v45 = vld [vmem:[#allocation8 + $0x68] sm:$0xf0] }
  0xe1   :  { %2140 = vmatpush.bf16.msra.mxu1 %v3339_v8  ;;  %v1383_v19 = vadd.f32 %v1382_v15, %v1369_v13  ;;  %v1396_v55 = vpop.f32.mrf.mxu1  ;;  %v1723_v40 = vsel %vm1707_vm1, %v1409_v18, %v1715_v30  ;;  %v3410_v13 = vld [vmem:[#allocation8 + $0x170] sm:$0xf]  ;;  %v3744_v18 = vld [vmem:[#allocation8 + $0x24] sm:$0xf]  ;;  %v3785_v30 = vld [vmem:[#allocation8 + $0x164] sm:$0xf0] }
  0xe2   :  { %2126 = vmatpush.bf16.msra.mxu3 %v3275_v31  ;;  %1673 = vmatmul.bf16.vlgmr.msra.gmra.mxu2 %v4080_v37  ;;  %v3314_v37 = vld [vmem:[#allocation8 + $0xb0] sm:$0xf] }
  0xe3   :  { %1700 = vmatpush.bf16.msrb.mxu2 %v3219_v26  ;;  %1687 = vmatmul.bf16.vlgmr.msrb.gmra.mxu0 %v4082_v42  ;;  %v3315_v9 = vor.u32 %v3763_v1, %v3314_v37  ;;  %v3743_v42 = vld [vmem:[#allocation8 + $0x14] sm:$0xf0]  ;;  %v1397_v22 = vadd.f32 %v1396_v55, %v1383_v19  ;;  %v3741_v26 = vld [vmem:[#allocation8 + $0x4] sm:$0xf0]  ;;  %v3324_v37 = vld [vmem:[#allocation8 + $0xc8] sm:$0xf0]  ;;  %v1423_v1 = vadd.f32 %v1422_v43, %v324_v59 }
  0xe4   :  { %v3235_v23 = vor.u32 %v3743_v42, %v3234_v16  ;;  %v3227_v8 = vor.u32 %v3741_v26, %v3226_v24  ;;  %v3327_v6 = vor.u32 %v3764_v0, %v3324_v37  ;;  %v3244_v19 = vld [vmem:[#allocation8 + $0x28] sm:$0xf0]  ;;  %v3319_v55 = vor.u32 %v3762_v10, %v3316_v11  ;;  %v3742_v24 = vld [vmem:[#allocation8 + $0x14] sm:$0xf] }
  0xe5   :  { %2141 = vmatpush.bf16.msra.mxu1 %v3331_v51  ;;  %v1411_v31 = vadd.f32 %v1410_v25, %v1397_v22  ;;  %v1436_v49 = vpop.f32.mrf.mxu2  ;;  %v3279_v51 = vor.u32 %v3752_v44, %v3276_v45  ;;  %v3228_v43 = vld [vmem:[#allocation8 + $0x8] sm:$0xf0]  ;;  %v3303_v44 = vor.u32 %v3758_v32, %v3300_v33  ;;  %v325_v33 = vperm.slane %v4104_v38, 2 }
  0xe6   :  { %2127 = vmatpush.bf16.msra.mxu3 %v3267_v54  ;;  %v3768_v54 = vld [vmem:[#allocation8 + $0xe4] sm:$0xf]  ;;  %v1437_v12 = vadd.f32 %v1436_v49, %v1423_v1 }
  0xe7   :  { %vm1711_vm2 = vcmp.gt.f32.partialorder %v1411_v31, 0.0  ;;  %v1719_v36 = vmul.f32 0.2, %v1411_v31  ;;  %v3343_v56 = vor.u32 %v3768_v54, %v3340_v48  ;;  %v3756_v54 = vld [vmem:[#allocation8 + $0x84] sm:$0xf] }
  0xe8   :  { %v1424_v2 = vpop.f32.mrf.mxu3  ;;  %v3292_v48 = vld [vmem:[#allocation8 + $0x88] sm:$0xf0] }
  0xe9   :  { %2142 = vmatpush.bf16.msra.mxu1 %v3323_v52  ;;  %v1727_v41 = vsel %vm1711_vm2, %v1411_v31, %v1719_v36  ;;  %v3260_v52 = vld [vmem:[#allocation8 + $0x48] sm:$0xf0]  ;;  %v1425_v42 = vadd.f32 %v1424_v2, %v324_v59  ;;  %v3394_v36 = vld [vmem:[#allocation8 + $0x150] sm:$0xf]  ;;  %v3295_v53 = vor.u32 %v3756_v54, %v3292_v48  ;;  %v3781_v59 = vld [vmem:[#allocation8 + $0x144] sm:$0xf0] }
  0xea   :  { %2128 = vmatpush.bf16.msra.mxu3 %v3259_v58  ;;  %v4117_v47 = vpack.c.bf16 %v1727_v41, %v1723_v40  ;;  %v3332_v58 = vld [vmem:[#allocation8 + $0xd8] sm:$0xf0]  ;;  %v3263_v3 = vor.u32 %v3748_v62, %v3260_v52  ;;  %v3740_v41 = vld [vmem:[#allocation8 + $0x4] sm:$0xf]  ;;  %v3378_v52 = vld [vmem:[#allocation8 + $0x130] sm:$0xf] }
  0xeb   :  { %v3335_v63 = vor.u32 %v3766_v57, %v3332_v58  ;;  %v3386_v58 = vld [vmem:[#allocation8 + $0x140] sm:$0xf]  ;;  %v3801_v54 = vld [vmem:[#allocation8 + $0x1e4] sm:$0xf0] }
  0xec   :  { %v3387_v62 = vor.u32 %v3781_v59, %v3386_v58 }
  0xed   :  { %2143 = vmatpush.bf16.msra.mxu1 %v3315_v9  ;;  %v1438_v9 = vpop.f32.mrf.mxu2 }
  0xee   :  { %2129 = vmatpush.bf16.msra.mxu3 %v3251_v4  ;;  %v3746_v4 = vld [vmem:[#allocation8 + $0x34] sm:$0xf]  ;;  %v1439_v25 = vadd.f32 %v1438_v9, %v1425_v42 }
  0xef   :  { %v3255_v15 = vor.u32 %v3746_v4, %v3252_v5  ;;  %v3370_v5 = vld [vmem:[#allocation8 + $0x120] sm:$0xf] }
  0xf1   :  { %2144 = vmatpush.bf16.msra.mxu1 %v3307_v17 }
  0xf2   :  { %2130 = vmatpush.bf16.msra.mxu3 %v3243_v14  ;;  %3223 = vmatmul.msk.bf16.vlgmr.msrb.gmra.mxu2 %vm1311_vm0, %v4076_v50  ;;  %v3287_v50 = vor.u32 %v3754_v27, %v3284_v28  ;;  %v3787_v14 = vld [vmem:[#allocation8 + $0x174] sm:$0xf0]  ;;  %v3236_v27 = vld [vmem:[#allocation8 + $0x18] sm:$0xf0]  ;;  %v3311_v28 = vor.u32 %v3760_v20, %v3308_v21  ;;  %v3784_v21 = vld [vmem:[#allocation8 + $0x164] sm:$0xf] }
  0xf3   :  { %v3411_v16 = vor.u32 %v3787_v14, %v3410_v13  ;;  %v3775_v13 = vld [vmem:[#allocation8 + $0x114] sm:$0xf0] }
  0xf5   :  { %2145 = vmatpush.bf16.msra.mxu1 %v3299_v29  ;;  %2153 = vmatpush.bf16.msra.mxu2 %v3411_v16  ;;  %v3402_v29 = vld [vmem:[#allocation8 + $0x160] sm:$0xf] }
  0xf6   :  { %2131 = vmatpush.bf16.msra.mxu3 %v3235_v23  ;;  %v3247_v23 = vor.u32 %v3744_v18, %v3244_v19  ;;  %v3403_v34 = vor.u32 %v3785_v30, %v3402_v29  ;;  %v3786_v19 = vld [vmem:[#allocation8 + $0x174] sm:$0xf]  ;;  %v3780_v29 = vld [vmem:[#allocation8 + $0x144] sm:$0xf]  ;;  %v3388_v30 = vld [vmem:[#allocation8 + $0x148] sm:$0xf0] }
  0xf8   :  { %v1450_v7 = vpop.f32.mrf.mxu0 }
  0xf9   :  { %2146 = vmatpush.bf16.msra.mxu1 %v3291_v39  ;;  %v1464_v17 = vpop.f32.mrf.mxu1  ;;  %v1451_v22 = vadd.f32 %v1450_v7, %v1437_v12  ;;  %2154 = vmatpush.bf16.msra.mxu2 %v3403_v34  ;;  %v3783_v39 = vld [vmem:[#allocation8 + $0x154] sm:$0xf0]  ;;  %v3362_v12 = vld [vmem:[#allocation8 + $0x110] sm:$0xf]  ;;  %v3778_v34 = vld [vmem:[#allocation8 + $0x134] sm:$0xf] }
  0xfa   :  { %2132 = vmatpush.bf16.msra.mxu3 %v3227_v8  ;;  %v3395_v45 = vor.u32 %v3783_v39, %v3394_v36  ;;  %v3363_v16 = vor.u32 %v3775_v13, %v3362_v12  ;;  %v3442_v13 = vld [vmem:[#allocation8 + $0x1b0] sm:$0xf] }
  0xfb   :  { %v1465_v35 = vadd.f32 %v1464_v17, %v1451_v22  ;;  %v3773_v17 = vld [vmem:[#allocation8 + $0x104] sm:$0xf0]  ;;  %v3404_v22 = vld [vmem:[#allocation8 + $0x168] sm:$0xf0] }
  0xfd   :  { %2195 = vmatpush.bf16.msrb.mxu1 %v3351_v46  ;;  %2133 = vmatmul.bf16.vlgmr.msra.gmra.mxu3 %v4117_v47 }
  0xfe   :  { %2181 = vmatpush.bf16.msrb.mxu3 %v3287_v50  ;;  %v3239_v50 = vor.u32 %v3742_v24, %v3236_v27  ;;  %2155 = vmatpush.bf16.msra.mxu2 %v3395_v45 }
 0x100   :  { %v1478_v26 = vpop.f32.mrf.mxu3  ;;  %v1452_v31 = vpop.f32.mrf.mxu0 }
 0x101   :  { %2196 = vmatpush.bf16.msrb.mxu1 %v3343_v56  ;;  %v1453_v40 = vadd.f32 %v1452_v31, %v1439_v25  ;;  %v1466_v46 = vpop.f32.mrf.mxu1  ;;  %v1479_v49 = vadd.f32 %v1478_v26, %v1465_v35  ;;  %v3782_v25 = vld [vmem:[#allocation8 + $0x154] sm:$0xf]  ;;  %v3396_v26 = vld [vmem:[#allocation8 + $0x158] sm:$0xf0]  ;;  %v3391_v31 = vor.u32 %v3780_v29, %v3388_v30 }
 0x102   :  { %2182 = vmatpush.bf16.msrb.mxu3 %v3279_v51  ;;  %v3231_v51 = vor.u32 %v3740_v41, %v3228_v43  ;;  %2156 = vmatpush.bf16.msra.mxu2 %v3387_v62  ;;  %v3399_v27 = vor.u32 %v3782_v25, %v3396_v26  ;;  %v3380_v35 = vld [vmem:[#allocation8 + $0x138] sm:$0xf0]  ;;  %v3776_v43 = vld [vmem:[#allocation8 + $0x124] sm:$0xf]  ;;  %v3791_v25 = vld [vmem:[#allocation8 + $0x194] sm:$0xf0] }
 0x103   :  { %v1467_v60 = vadd.f32 %v1466_v46, %v1453_v40  ;;  %v3383_v36 = vor.u32 %v3778_v34, %v3380_v35  ;;  %v3466_v46 = vld [vmem:[#allocation8 + $0x1e0] sm:$0xf]  ;;  %v3802_v34 = vld [vmem:[#allocation8 + $0x1f4] sm:$0xf]  ;;  %v3476_v35 = vld [vmem:[#allocation8 + $0x1f8] sm:$0xf0] }
 0x105   :  { %2197 = vmatpush.bf16.msrb.mxu1 %v3335_v63  ;;  %v1492_v8 = vpop.f32.mrf.mxu2  ;;  %v3779_v63 = vld [vmem:[#allocation8 + $0x134] sm:$0xf0] }
 0x106   :  { %2183 = vmatpush.bf16.msrb.mxu3 %v3271_v61  ;;  %v1493_v61 = vadd.f32 %v1492_v8, %v1479_v49  ;;  %v3379_v37 = vor.u32 %v3779_v63, %v3378_v52  ;;  %v3474_v8 = vld [vmem:[#allocation8 + $0x1f0] sm:$0xf]  ;;  %v3467_v49 = vor.u32 %v3801_v54, %v3466_v46  ;;  %v3460_v46 = vld [vmem:[#allocation8 + $0x1d8] sm:$0xf0] }
 0x108   :  { %v1480_v56 = vpop.f32.mrf.mxu3  ;;  %v1506_v57 = vpop.f32.mrf.mxu0  ;;  %2157 = vmatpush.bf16.msra.mxu2 %v3379_v37  ;;  %v3772_v37 = vld [vmem:[#allocation8 + $0x104] sm:$0xf] }
 0x109   :  { %2198 = vmatpush.bf16.msrb.mxu1 %v3327_v6  ;;  %v1481_v0 = vadd.f32 %v1480_v56, %v1467_v60  ;;  %v1507_v2 = vadd.f32 %v1506_v57, %v1493_v61  ;;  %v3777_v6 = vld [vmem:[#allocation8 + $0x124] sm:$0xf0]  ;;  %v3774_v60 = vld [vmem:[#allocation8 + $0x114] sm:$0xf]  ;;  %v3458_v56 = vld [vmem:[#allocation8 + $0x1d0] sm:$0xf] }
 0x10a   :  { %2184 = vmatpush.bf16.msrb.mxu3 %v3263_v3  ;;  %v3371_v10 = vor.u32 %v3777_v6, %v3370_v5  ;;  %v3799_v61 = vld [vmem:[#allocation8 + $0x1d4] sm:$0xf0]  ;;  %v3797_v5 = vld [vmem:[#allocation8 + $0x1c4] sm:$0xf0] }
 0x10b   :  { %v1716_v7 = vmul.f32 0.2, %v1507_v2  ;;  %vm1708_vm3 = vcmp.gt.f32.partialorder %v1507_v2, 0.0  ;;  %v3459_v52 = vor.u32 %v3799_v61, %v3458_v56  ;;  %v326_v56 = vperm.slane %v4104_v38, 3 }
 0x10c   :  { %2158 = vmatpush.bf16.msra.mxu2 %v3371_v10 }
 0x10d   :  { %2199 = vmatpush.bf16.msrb.mxu1 %v3319_v55  ;;  %v1494_v1 = vpop.f32.mrf.mxu2  ;;  %v1724_v14 = vsel %vm1708_vm3, %v1507_v2, %v1716_v7  ;;  %v3412_v55 = vld [vmem:[#allocation8 + $0x178] sm:$0xf0] }
 0x10e   :  { %2185 = vmatpush.bf16.msrb.mxu3 %v3255_v15  ;;  %v1495_v3 = vadd.f32 %v1494_v1, %v1481_v0  ;;  %v3415_v20 = vor.u32 %v3786_v19, %v3412_v55  ;;  %v3356_v1 = vld [vmem:[#allocation8 + $0x108] sm:$0xf0]  ;;  %v3793_v19 = vld [vmem:[#allocation8 + $0x1a4] sm:$0xf0] }
 0x110   :  { %v1508_v4 = vpop.f32.mrf.mxu0  ;;  %2159 = vmatpush.bf16.msra.mxu2 %v3363_v16 }
 0x111   :  { %2200 = vmatpush.bf16.msrb.mxu1 %v3311_v28  ;;  %v1509_v9 = vadd.f32 %v1508_v4, %v1495_v3  ;;  %v3359_v3 = vor.u32 %v3772_v37, %v3356_v1  ;;  %v3450_v4 = vld [vmem:[#allocation8 + $0x1c0] sm:$0xf]  ;;  %v3792_v37 = vld [vmem:[#allocation8 + $0x1a4] sm:$0xf]  ;;  %v3436_v1 = vld [vmem:[#allocation8 + $0x1a8] sm:$0xf0] }
 0x112   :  { %2186 = vmatpush.bf16.msrb.mxu3 %v3247_v23  ;;  %v3407_v23 = vor.u32 %v3784_v21, %v3404_v22  ;;  %v3451_v6 = vor.u32 %v3797_v5, %v3450_v4  ;;  %v3428_v4 = vld [vmem:[#allocation8 + $0x198] sm:$0xf0] }
 0x113   :  { %vm1712_vm4 = vcmp.gt.f32.partialorder %v1509_v9, 0.0  ;;  %v1720_v11 = vmul.f32 0.2, %v1509_v9 }
 0x115   :  { %2201 = vmatpush.bf16.msrb.mxu1 %v3303_v44  ;;  %v1728_v15 = vsel %vm1712_vm4, %v1509_v9, %v1720_v11  ;;  %v3372_v44 = vld [vmem:[#allocation8 + $0x128] sm:$0xf0] }
 0x116   :  { %2187 = vmatpush.bf16.msrb.mxu3 %v3239_v50  ;;  %v1732_v42 = vpack.c.bf16 %v1728_v15, %v1724_v14  ;;  %v3803_v50 = vld [vmem:[#allocation8 + $0x1f4] sm:$0xf0]  ;;  %v3375_v45 = vor.u32 %v3776_v43, %v3372_v44  ;;  %v3468_v43 = vld [vmem:[#allocation8 + $0x1e8] sm:$0xf0] }
 0x117   :  { %v3475_v40 = vor.u32 %v3803_v50, %v3474_v8  ;;  %v3795_v14 = vld [vmem:[#allocation8 + $0x1b4] sm:$0xf0] }
 0x118   :  { %2147 = vmatmul.bf16.vlgmr.msra.gmra.mxu1 %v1732_v42  ;;  %v3443_v16 = vor.u32 %v3795_v14, %v3442_v13 }
 0x119   :  { %2202 = vmatpush.bf16.msrb.mxu1 %v3295_v53  ;;  %v1520_v24 = vpop.f32.mrf.mxu1  ;;  %2167 = vmatpush.bf16.msra.mxu0 %v3475_v40  ;;  %v3364_v53 = vld [vmem:[#allocation8 + $0x118] sm:$0xf0] }
 0x11a   :  { %2188 = vmatpush.bf16.msrb.mxu3 %v3231_v51  ;;  %v1521_v41 = vadd.f32 %v1520_v24, %v325_v33  ;;  %v3367_v59 = vor.u32 %v3774_v60, %v3364_v53  ;;  %v3426_v24 = vld [vmem:[#allocation8 + $0x190] sm:$0xf]  ;;  %v3452_v60 = vld [vmem:[#allocation8 + $0x1c8] sm:$0xf0] }
 0x11c   :  { %v1548_v28 = vpop.f32.mrf.mxu0 }
 0x11d   :  { %2189 = vmatmul.bf16.vlgmr.msrb.gmra.mxu3 %v4117_v47  ;;  %v3354_v47 = vld [vmem:[#allocation8 + $0x100] sm:$0xf]  ;;  %2168 = vmatpush.bf16.msra.mxu0 %v3467_v49 }
 0x11e   :  { %v3355_v18 = vor.u32 %v3773_v17, %v3354_v47 }
 0x120   :  { %2160 = vmatpush.bf16.msra.mxu2 %v3355_v18  ;;  %v1534_v32 = vpop.f32.mrf.mxu3  ;;  %v3434_v18 = vld [vmem:[#allocation8 + $0x1a0] sm:$0xf] }
 0x121   :  { %v1522_v39 = vpop.f32.mrf.mxu1  ;;  %v1535_v51 = vadd.f32 %v1534_v32, %v1521_v41  ;;  %2169 = vmatpush.bf16.msra.mxu0 %v3459_v52  ;;  %v3435_v21 = vor.u32 %v3793_v19, %v3434_v18  ;;  %v3418_v32 = vld [vmem:[#allocation8 + $0x180] sm:$0xf]  ;;  %v3800_v41 = vld [vmem:[#allocation8 + $0x1e4] sm:$0xf] }
 0x122   :  { %v1523_v62 = vadd.f32 %v1522_v39, %v325_v33  ;;  %v3789_v33 = vld [vmem:[#allocation8 + $0x184] sm:$0xf0]  ;;  %v3479_v39 = vor.u32 %v3802_v34, %v3476_v35  ;;  %v3471_v44 = vor.u32 %v3800_v41, %v3468_v43  ;;  %v3808_v34 = vld [vmem:[#allocation10 + $0x20] sm:$0xff]  ;;  %v3807_v35 = vld [vmem:[#allocation10 + $0x18] sm:$0xff] }
 0x123   :  { %v1549_v0 = vadd.f32 %v1548_v28, %v1535_v51  ;;  %v3419_v50 = vor.u32 %v3789_v33, %v3418_v32  ;;  %v3796_v51 = vld [vmem:[#allocation8 + $0x1c4] sm:$0xf]  ;;  %v3810_v32 = vld [vmem:[#allocation10 + $0x30] sm:$0xff]  ;;  %v3809_v33 = vld [vmem:[#allocation10 + $0x28] sm:$0xff] }
 0x124   :  { %2209 = vmatpush.bf16.msrb.mxu2 %v3415_v20  ;;  %v1550_v48 = vpop.f32.mrf.mxu0  ;;  %v3455_v53 = vor.u32 %v3796_v51, %v3452_v60  ;;  %v3804_v41 = vld [vmem:[#allocation10] sm:$0xff]  ;;  %v3813_v51 = vld [vmem:[#allocation10 + $0x48] sm:$0xff] }
 0x125   :  { %v1562_v57 = vpop.f32.mrf.mxu2  ;;  %2170 = vmatpush.bf16.msra.mxu0 %v3451_v6  ;;  %v3816_v43 = vld [vmem:[#allocation10 + $0x60] sm:$0xff] }
 0x126   :  { %v1563_v7 = vadd.f32 %v1562_v57, %v1549_v0  ;;  %v3794_v57 = vld [vmem:[#allocation8 + $0x1b4] sm:$0xf] }
 0x128   :  { %2210 = vmatpush.bf16.msrb.mxu2 %v3407_v23  ;;  %2203 = vmatmul.bf16.vlgmr.msrb.gmra.mxu1 %v1732_v42  ;;  %v1536_v58 = vpop.f32.mrf.mxu3 }
 0x129   :  { %v1537_v2 = vadd.f32 %v1536_v58, %v1523_v62  ;;  %2171 = vmatpush.bf16.msra.mxu0 %v3443_v16  ;;  %v3444_v58 = vld [vmem:[#allocation8 + $0x1b8] sm:$0xf0] }
 0x12a   :  { %v3447_v62 = vor.u32 %v3794_v57, %v3444_v58 }
 0x12b   :  { %v1551_v11 = vadd.f32 %v1550_v48, %v1537_v2  ;;  %v3439_v2 = vor.u32 %v3792_v37, %v3436_v1 }
 0x12c   :  { %2211 = vmatpush.bf16.msrb.mxu2 %v3399_v27  ;;  %v1604_v9 = vpop.f32.mrf.mxu0  ;;  %v3427_v27 = vor.u32 %v3791_v25, %v3426_v24 }
 0x12d   :  { %v1564_v15 = vpop.f32.mrf.mxu2  ;;  %2172 = vmatpush.bf16.msra.mxu0 %v3435_v21 }
 0x12e   :  { %v1565_v17 = vadd.f32 %v1564_v15, %v1551_v11 }
 0x130   :  { %2212 = vmatpush.bf16.msrb.mxu2 %v3391_v31 }
 0x131   :  { %2173 = vmatpush.bf16.msra.mxu0 %v3427_v27 }
 0x134   :  { %2213 = vmatpush.bf16.msrb.mxu2 %v3383_v36  ;;  %v1606_v26 = vpop.f32.mrf.mxu0 }
 0x135   :  { %2174 = vmatpush.bf16.msra.mxu0 %v3419_v50  ;;  %v3818_v50 = vld [vmem:[#allocation10 + $0x70] sm:$0xff] }
 0x138   :  { %2214 = vmatpush.bf16.msrb.mxu2 %v3375_v45  ;;  %v3798_v45 = vld [vmem:[#allocation8 + $0x1d4] sm:$0xf] }
 0x139   :  { %v1576_v63 = vpop.f32.mrf.mxu1  ;;  %2223 = vmatpush.bf16.msrb.mxu0 %v3479_v39  ;;  %v3463_v49 = vor.u32 %v3798_v45, %v3460_v46  ;;  %v3805_v39 = vld [vmem:[#allocation10 + $0x8] sm:$0xff] }
 0x13a   :  { %v1577_v12 = vadd.f32 %v1576_v63, %v1563_v7 }
 0x13c   :  { %2215 = vmatpush.bf16.msrb.mxu2 %v3367_v59 }
 0x13d   :  { %2224 = vmatpush.bf16.msrb.mxu0 %v3471_v44  ;;  %v3815_v44 = vld [vmem:[#allocation10 + $0x58] sm:$0xff] }
 0x140   :  { %2216 = vmatpush.bf16.msrb.mxu2 %v3359_v3  ;;  %v1590_v10 = vpop.f32.mrf.mxu3  ;;  %v1632_v54 = vpop.f32.mrf.mxu0  ;;  %v3790_v3 = vld [vmem:[#allocation8 + $0x194] sm:$0xf] }
 0x141   :  { %v1591_v42 = vadd.f32 %v1590_v10, %v1577_v12  ;;  %v1578_v47 = vpop.f32.mrf.mxu1  ;;  %2225 = vmatpush.bf16.msrb.mxu0 %v3463_v49  ;;  %v3431_v38 = vor.u32 %v3790_v3, %v3428_v4  ;;  %v3420_v10 = vld [vmem:[#allocation8 + $0x188] sm:$0xf0] }
 0x142   :  { %v1579_v20 = vadd.f32 %v1578_v47, %v1565_v17  ;;  %v1799_v49 = vld [vmem:[%s4140_s4] sm:$0x3] }
 0x143   :  { %v1605_v55 = vadd.f32 %v1604_v9, %v1591_v42  ;;  %v3788_v9 = vld [vmem:[#allocation8 + $0x184] sm:$0xf]  ;;  %v1801_v60 = vperm.slane %v1799_v49, 0 }
 0x144   :  { %v3423_v16 = vor.u32 %v3788_v9, %v3420_v10 }
 0x145   :  { %v1717_v28 = vmul.f32 0.2, %v1605_v55  ;;  %vm1709_vm5 = vcmp.gt.f32.partialorder %v1605_v55, 0.0  ;;  %v1618_v31 = vpop.f32.mrf.mxu2  ;;  %2226 = vmatpush.bf16.msrb.mxu0 %v3455_v53  ;;  %v3812_v53 = vld [vmem:[#allocation10 + $0x40] sm:$0xff] }
 0x146   :  { %v1619_v0 = vadd.f32 %v1618_v31, %v326_v56  ;;  %v3811_v31 = vld [vmem:[#allocation10 + $0x38] sm:$0xff] }
 0x147   :  { %v1725_v36 = vsel %vm1709_vm5, %v1605_v55, %v1717_v28  ;;  %2383 = vmatpush.bf16.msra.mxu3 %v3811_v31 }
 0x148   :  { %v1592_v22 = vpop.f32.mrf.mxu3  ;;  %v1634_v52 = vpop.f32.mrf.mxu0  ;;  %v1633_v5 = vadd.f32 %v1632_v54, %v1619_v0  ;;  %v3814_v54 = vld [vmem:[#allocation10 + $0x50] sm:$0xff] }
 0x149   :  { %v1593_v23 = vadd.f32 %v1592_v22, %v1579_v20  ;;  %2227 = vmatpush.bf16.msrb.mxu0 %v3447_v62 }
 0x14b   :  { %v1607_v29 = vadd.f32 %v1606_v26, %v1593_v23  ;;  %2384 = vmatpush.bf16.msra.mxu3 %v3810_v32 }
 0x14d   :  { %vm1713_vm6 = vcmp.gt.f32.partialorder %v1607_v29, 0.0  ;;  %v1721_v30 = vmul.f32 0.2, %v1607_v29  ;;  %v1620_v48 = vpop.f32.mrf.mxu2  ;;  %2228 = vmatpush.bf16.msrb.mxu0 %v3439_v2 }
 0x14e   :  { %v1621_v6 = vadd.f32 %v1620_v48, %v326_v56 }
 0x14f   :  { %v1729_v8 = vsel %vm1713_vm6, %v1607_v29, %v1721_v30  ;;  %2385 = vmatpush.bf16.msra.mxu3 %v3809_v33 }
 0x150   :  { %v1733_v40 = vpack.c.bf16 %v1729_v8, %v1725_v36  ;;  %v1635_v14 = vadd.f32 %v1634_v52, %v1621_v6  ;;  %v3819_v36 = vld [vmem:[#allocation10 + $0x78] sm:$0xff]  ;;  %v3806_v8 = vld [vmem:[#allocation10 + $0x10] sm:$0xff] }
 0x151   :  { %2229 = vmatpush.bf16.msrb.mxu0 %v3431_v38  ;;  %2397 = vmatpush.bf16.msra.mxu1 %v3819_v36 }
 0x152   :  { %2161 = vmatmul.bf16.vlgmr.msra.gmra.mxu2 %v1733_v40 }
 0x153   :  { %2386 = vmatpush.bf16.msra.mxu3 %v3808_v34 }
 0x155   :  { %2230 = vmatpush.bf16.msrb.mxu0 %v3423_v16  ;;  %2398 = vmatpush.bf16.msra.mxu1 %v3818_v50 }
 0x157   :  { %2387 = vmatpush.bf16.msra.mxu3 %v3807_v35 }
 0x159   :  { %v1646_v59 = vpop.f32.mrf.mxu1 }
 0x15a   :  { %v1647_v11 = vadd.f32 %v1646_v59, %v1633_v5 }
 0x15b   :  { %2388 = vmatpush.bf16.msra.mxu3 %v3806_v8 }
 0x15f   :  { %2389 = vmatpush.bf16.msra.mxu3 %v3805_v39 }
 0x160   :  { %v1660_v63 = vpop.f32.mrf.mxu3  ;;  %v1688_v13 = vpop.f32.mrf.mxu0 }
 0x161   :  { %v1648_v12 = vpop.f32.mrf.mxu1  ;;  %v1661_v15 = vadd.f32 %v1660_v63, %v1647_v11 }
 0x162   :  { %2217 = vmatmul.bf16.vlgmr.msrb.gmra.mxu2 %v1733_v40  ;;  %v1649_v47 = vadd.f32 %v1648_v12, %v1635_v14  ;;  %v3817_v40 = vld [vmem:[#allocation10 + $0x68] sm:$0xff] }
 0x163   :  { %2399 = vmatpush.bf16.msra.mxu1 %v3817_v40  ;;  %2390 = vmatpush.bf16.msra.mxu3 %v3804_v41 }
 0x165   :  { %v1674_v61 = vpop.f32.mrf.mxu2 }
 0x166   :  { %v1675_v17 = vadd.f32 %v1674_v61, %v1661_v15 }
 0x167   :  { %2400 = vmatpush.bf16.msra.mxu1 %v3816_v43 }
 0x168   :  { %v1662_v42 = vpop.f32.mrf.mxu3  ;;  %v1689_v55 = vadd.f32 %v1688_v13, %v1675_v17  ;;  %v1690_v21 = vpop.f32.mrf.mxu0 }
 0x169   :  { %v1663_v18 = vadd.f32 %v1662_v42, %v1649_v47 }
 0x16b   :  { %2401 = vmatpush.bf16.msra.mxu1 %v3815_v44 }
 0x16d   :  { %v1676_v7 = vpop.f32.mrf.mxu2 }
 0x16e   :  { %v1677_v20 = vadd.f32 %v1676_v7, %v1663_v18  ;;  %v1802_v7 = vperm.slane %v1799_v49, 1 }
 0x16f   :  { %2402 = vmatpush.bf16.msra.mxu1 %v3814_v54 }
 0x170   :  { %v1691_v23 = vadd.f32 %v1690_v21, %v1677_v20 }
 0x173   :  { %2403 = vmatpush.bf16.msra.mxu1 %v3813_v51 }
 0x175   :  { %v1702_v19 = vpop.f32.mrf.mxu2 }
 0x176   :  { %v1703_v22 = vadd.f32 %v1702_v19, %v1689_v55 }
 0x177   :  { %2404 = vmatpush.bf16.msra.mxu1 %v3812_v53 }
 0x178   :  { %v1718_v25 = vmul.f32 0.2, %v1703_v22  ;;  %vm1710_vm7 = vcmp.gt.f32.partialorder %v1703_v22, 0.0 }
 0x17a   :  { %v1726_v28 = vsel %vm1710_vm7, %v1703_v22, %v1718_v25 }
 0x17d   :  { %v1704_v24 = vpop.f32.mrf.mxu2 }
 0x17e   :  { %v1705_v26 = vadd.f32 %v1704_v24, %v1691_v23 }
 0x180   :  { %vm1714_vm8 = vcmp.gt.f32.partialorder %v1705_v26, 0.0  ;;  %v1722_v27 = vmul.f32 0.2, %v1705_v26  ;;  %v2134_v45 = vpop.f32.mrf.mxu3 }
 0x181   :  { %v2135_v58 = vadd.f32 %v2134_v45, %v1801_v60 }
 0x182   :  { %v1730_v29 = vsel %vm1714_vm8, %v1705_v26, %v1722_v27 }
 0x183   :  { %v1734_v30 = vpack.c.bf16 %v1730_v29, %v1726_v28 }
 0x185   :  { %2175 = vmatmul.bf16.vlgmr.msra.gmra.mxu0 %v1734_v30 }
 0x188   :  { %v2136_v56 = vpop.f32.mrf.mxu3 }
 0x189   :  { %v2137_v52 = vadd.f32 %v2136_v56, %v1801_v60 }
 0x195   :  { %2231 = vmatmul.bf16.vlgmr.msrb.gmra.mxu0 %v1734_v30  ;;  %v2148_v46 = vpop.f32.mrf.mxu1  ;;  %v3839_v30 = vld [vmem:[%s4142_s6] ss:$0 sm:$0xff] }
 0x196   :  { %v2149_v62 = vadd.f32 %v2148_v46, %v2135_v58 }
 0x19d   :  { %v2150_v57 = vpop.f32.mrf.mxu1 }
 0x19e   :  { %v2151_v0 = vadd.f32 %v2150_v57, %v2137_v52 }
 0x1a0   :  { %v2190_v1 = vpop.f32.mrf.mxu3 }
 0x1a1   :  { %v2191_v13 = vadd.f32 %v2190_v1, %v1802_v7 }
 0x1a5   :  { %v2204_v3 = vpop.f32.mrf.mxu1 }
 0x1a6   :  { %v2205_v16 = vadd.f32 %v2204_v3, %v2191_v13 }
 0x1a8   :  { %v2192_v14 = vpop.f32.mrf.mxu3 }
 0x1a9   :  { %v2193_v47 = vadd.f32 %v2192_v14, %v1802_v7 }
 0x1ad   :  { %v2206_v42 = vpop.f32.mrf.mxu1 }
 0x1ae   :  { %v2207_v19 = vadd.f32 %v2206_v42, %v2193_v47 }
 0x1d5   :  { %v2162_v48 = vpop.f32.mrf.mxu2 }
 0x1d6   :  { %v2163_v63 = vadd.f32 %v2162_v48, %v2149_v62 }
 0x1dd   :  { %v2164_v59 = vpop.f32.mrf.mxu2 }
 0x1de   :  { %v2165_v2 = vadd.f32 %v2164_v59, %v2151_v0 }
 0x1e5   :  { %v2218_v38 = vpop.f32.mrf.mxu2 }
 0x1e6   :  { %v2219_v17 = vadd.f32 %v2218_v38, %v2205_v16 }
 0x1ed   :  { %v2220_v18 = vpop.f32.mrf.mxu2 }
 0x1ee   :  { %v2221_v20 = vadd.f32 %v2220_v18, %v2207_v19 }
 0x202   :  { %v2176_v61 = vpop.f32.mrf.mxu0 }
 0x203   :  { %v2177_v37 = vadd.f32 %v2176_v61, %v2163_v63 }
 0x205   :  { %v2241_v5 = vmul.f32 0.2, %v2177_v37  ;;  %vm2237_vm9 = vcmp.gt.f32.partialorder %v2177_v37, 0.0 }
 0x207   :  { %v2245_v10 = vsel %vm2237_vm9, %v2177_v37, %v2241_v5 }
 0x20a   :  { %v2178_v4 = vpop.f32.mrf.mxu0 }
 0x20b   :  { %v2179_v6 = vadd.f32 %v2178_v4, %v2165_v2 }
 0x20d   :  { %vm2239_vm10 = vcmp.gt.f32.partialorder %v2179_v6, 0.0  ;;  %v2243_v9 = vmul.f32 0.2, %v2179_v6 }
 0x20f   :  { %v2247_v11 = vsel %vm2239_vm10, %v2179_v6, %v2243_v9 }
 0x210   :  { %v2249_v12 = vpack.c.bf16 %v2247_v11, %v2245_v10 }
 0x212   :  { %v2232_v15 = vpop.f32.mrf.mxu0  ;;  %2391 = vmatmul.bf16.vlgmr.msra.gmra.mxu3 %v2249_v12 }
 0x213   :  { %v2233_v55 = vadd.f32 %v2232_v15, %v2219_v17 }
 0x215   :  { %v2242_v22 = vmul.f32 0.2, %v2233_v55  ;;  %vm2238_vm11 = vcmp.gt.f32.partialorder %v2233_v55, 0.0 }
 0x217   :  { %v2246_v25 = vsel %vm2238_vm11, %v2233_v55, %v2242_v22 }
 0x21a   :  { %v2234_v21 = vpop.f32.mrf.mxu0 }
 0x21b   :  { %v2235_v23 = vadd.f32 %v2234_v21, %v2221_v20 }
 0x21d   :  { %vm2240_vm12 = vcmp.gt.f32.partialorder %v2235_v23, 0.0  ;;  %v2244_v24 = vmul.f32 0.2, %v2235_v23 }
 0x21f   :  { %v2248_v26 = vsel %vm2240_vm12, %v2235_v23, %v2244_v24 }
 0x220   :  { %v2250_v27 = vpack.c.bf16 %v2248_v26, %v2246_v25 }
 0x222   :  { %2405 = vmatmul.bf16.vlgmr.msra.gmra.mxu1 %v2250_v27 }
 0x295   :  { %v2392_v28 = vpop.f32.mrf.mxu3 }
 0x296   :  { %v2393_v32 = vadd.f32 %v3839_v30, %v2392_v28 }
 0x29d   :  { %v2394_v31 = vpop.f32.mrf.mxu3 }
 0x29e   :  { %v2395_v33 = vadd.f32 %v3839_v30, %v2394_v31 }
 0x29f   :  { %v2406_v29 = vpop.f32.mrf.mxu1 }
 0x2a0   :  { %v2407_v35 = vadd.f32 %v2406_v29, %v2393_v32 }
 0x2a7   :  { %v2408_v34 = vpop.f32.mrf.mxu1 }
 0x2a8   :  { %v2409_v36 = vadd.f32 %v2408_v34, %v2395_v33 }
 0x2aa   :  { %v3823_v8 = vpack.c.bf16 %v2409_v36, %v2407_v35 }
 0x2ac   :  { %3824 = vst [vmem:[#allocation11] sm:$0xff] %v3823_v8  }
 0x2ad   :  { %2427 = dma.vmem_to_hbm [thread:$0]  %s2420_s10, 128, %s2422_s13, [#allocation4], %s4003_s29, %s4003_s29, %s4004_s30  }
 0x2ae   :  { %3990 = dma.done.wait [#allocation4], 128  }
 0x2af   :  { %3991 = vsyncadd [#allocation4], 4294967168 }
 0x2b0   :  { %2432 = vsyncpa [#allocation3], 1 }
 0x2b1   :  { %2433 = vsyncpa [#allocation6], 1 }
 0x2b2   :  { %2434 = vsyncpa [#allocation9], 1 }
 0x2b3   :  { %2435 = vsyncpa [#allocation4], 1 }

</bundles_post_ra>
